<compile_context>
chip_gen: v6e
topology: v6e:2x2x1
jax: 0.10.0
libtpu: 0.0.40
codegen_flags: <defaults>
</compile_context>

<pallas_src>
import jax
import jax.numpy as jnp
from jax.experimental import pallas as pl
from jax.experimental.pallas import tpu as pltpu

# --------------- small synthetic config (mirrors BEiT-base structure) --------
IMAGE_SIZE = 32          # (real model: 224)
PATCH_SIZE = 8           # (real model: 16)
NUM_CHANNELS = 3
HIDDEN = 32              # (real model: 768)
NUM_HEADS = 4            # (real model: 12)
HEAD_DIM = HIDDEN // NUM_HEADS
INTERMEDIATE = 4 * HIDDEN
NUM_LAYERS = 12
LN_EPS = 1e-12
LAYER_SCALE_INIT = 0.1   # BEiT layer_scale_init_value
NUM_PATCHES = (IMAGE_SIZE // PATCH_SIZE) ** 2
SEQ = NUM_PATCHES + 1            # +1 CLS token
SEQ_PAD = ((SEQ + 7) // 8) * 8   # sequence padded to a sublane multiple (24)
CPP = NUM_CHANNELS * PATCH_SIZE * PATCH_SIZE
ATTN_SCALE = 1.0 / (HEAD_DIM ** 0.5)
NEG_INF = -1e30


# ------------------------------ fused kernel ---------------------------------
def _layer_norm(x, g, b):
    mu = jnp.mean(x, axis=-1, keepdims=True)
    var = jnp.mean(jnp.square(x - mu), axis=-1, keepdims=True)
    return (x - mu) * jax.lax.rsqrt(var + LN_EPS) * g + b


def _beit_fused_kernel(patches_ref, patch_w_ref, patch_b_ref, cls_ref,
                       ln1g_ref, ln1b_ref, wqkv_ref, bqkv_ref, wo_ref, bo_ref,
                       relb_ref, lam1_ref, ln2g_ref, ln2b_ref,
                       w1_ref, b1_ref, w2_ref, b2_ref, lam2_ref,
                       feat_ref, hid_ref):
    layer = pl.program_id(1)

    # ---- patch embedding + CLS + zero pad rows (once per image, l == 0) -----
    @pl.when(layer == 0)
    def _():
        # BeitFeatureExtractor normalization (mean=0.5, std=0.5): (x-0.5)/0.5.
        p = patches_ref[...] * 2.0 - 1.0                             # (NP, C*P*P)
        emb = jnp.dot(p.astype(jnp.bfloat16), patch_w_ref[...],
                      preferred_element_type=jnp.float32) + patch_b_ref[...]
        hid_ref[...] = jnp.concatenate(
            [cls_ref[...], emb,
             jnp.zeros((SEQ_PAD - SEQ, HIDDEN), jnp.float32)], axis=0)

    x = hid_ref[...]                                                 # (SEQ_PAD, D) f32

    # ---- attention branch: LN -> fused QKV -> batched-head MHSA -> proj -----
    h = _layer_norm(x, ln1g_ref[...], ln1b_ref[...])
    qkv = jnp.dot(h.astype(jnp.bfloat16), wqkv_ref[...],
                  preferred_element_type=jnp.float32) + bqkv_ref[...]  # (SP, 3D)

    # Pack heads onto a leading batch axis (pure layout), then do ONE batched
    # score/context einsum pair for all heads (no per-head attention loop).
    def heads(off):
        return jnp.stack(
            [qkv[:, off + i * HEAD_DIM: off + (i + 1) * HEAD_DIM]
             for i in range(NUM_HEADS)], axis=0)                     # (H, SP, hd)

    qh, kh, vh = heads(0), heads(HIDDEN), heads(2 * HIDDEN)

    scores = jnp.einsum('hqc,hkc->hqk', qh.astype(jnp.bfloat16),
                        kh.astype(jnp.bfloat16),
                        preferred_element_type=jnp.float32) * ATTN_SCALE
    scores = scores + relb_ref[...]     # relative position bias; padded keys = -1e30
    mx = jnp.max(scores, axis=-1, keepdims=True)
    e = jnp.exp(scores - mx)
    probs = e * pl.reciprocal(jnp.sum(e, axis=-1, keepdims=True), approx=True)
    ctx = jnp.einsum('hqk,hkc->hqc', probs.astype(jnp.bfloat16),
                     vh.astype(jnp.bfloat16),
                     preferred_element_type=jnp.float32)             # (H, SP, hd)
    ctx = jnp.concatenate([ctx[i] for i in range(NUM_HEADS)], axis=-1)  # (SP, D)

    attn = jnp.dot(ctx.astype(jnp.bfloat16), wo_ref[...],
                   preferred_element_type=jnp.float32) + bo_ref[...]
    x = x + lam1_ref[...] * attn                        # residual 1 (layer scale)

    # ---- MLP branch: LN -> dense / GELU / dense -> layer scale ---------------
    h = _layer_norm(x, ln2g_ref[...], ln2b_ref[...])
    m1 = jnp.dot(h.astype(jnp.bfloat16), w1_ref[...],
                 preferred_element_type=jnp.float32) + b1_ref[...]
    # TODO(synk): HF BEiT uses exact erf-GELU; tanh approximation used for EUP lowering.
    m1 = jax.nn.gelu(m1, approximate=True)
    m2 = jnp.dot(m1.astype(jnp.bfloat16), w2_ref[...],
                 preferred_element_type=jnp.float32) + b2_ref[...]
    x = x + lam2_ref[...] * m2                          # residual 2 (layer scale)

    hid_ref[...] = x

    # ---- hidden_states[12][:, 1:, :] -> mean over patch tokens (last layer) --
    @pl.when(layer == NUM_LAYERS - 1)
    def _():
        feat_ref[...] = jnp.mean(x[1:SEQ, :], axis=0, keepdims=True)


# ------------------------------ parameters -----------------------------------
def init_params(key):
    d, inter, h, L = HIDDEN, INTERMEDIATE, NUM_HEADS, NUM_LAYERS
    ks = jax.random.split(key, 7)

    def normal(k, shape, scale=0.02, dtype=jnp.float32):
        return (scale * jax.random.normal(k, shape, dtype=jnp.float32)).astype(dtype)

    # Relative-position bias padded SEQ -> SEQ_PAD on both axes; padded *key*
    # columns carry -1e30 so padded positions get zero attention probability.
    rb = normal(ks[4], (L, h, SEQ, SEQ))
    rel = jnp.zeros((L, h, SEQ_PAD, SEQ_PAD), jnp.float32)
    rel = rel.at[:, :, :SEQ, :SEQ].set(rb)
    key_mask = jnp.where(jnp.arange(SEQ_PAD) < SEQ, 0.0, NEG_INF).astype(jnp.float32)
    rel = rel + key_mask[None, None, None, :]

    return {
        # Conv2d(C, D, P, P) weight pre-flattened to (C*P*P, D) so the patch
        # embedding is a single matmul over im2col'd patches.  MXU weights are
        # stored in bf16 (f32 accumulation in-kernel); elementwise params f32.
        'patch_w': normal(ks[0], (CPP, d), dtype=jnp.bfloat16),
        'patch_b': jnp.zeros((1, d), jnp.float32),
        'cls': normal(ks[1], (1, d)),
        # stacked per-layer weights (leading layer dim -> pipelined weight DMA)
        'ln1_g': jnp.ones((L, 1, d), jnp.float32),
        'ln1_b': jnp.zeros((L, 1, d), jnp.float32),
        'wqkv': normal(ks[2], (L, d, 3 * d), dtype=jnp.bfloat16),
        'bqkv': jnp.zeros((L, 1, 3 * d), jnp.float32),  # key slot stays 0 (BEiT: no key bias)
        'wo': normal(ks[3], (L, d, d), dtype=jnp.bfloat16),
        'bo': jnp.zeros((L, 1, d), jnp.float32),
        'rel_bias': rel,
        'lambda_1': jnp.full((L, 1, d), LAYER_SCALE_INIT, jnp.float32),
        'ln2_g': jnp.ones((L, 1, d), jnp.float32),
        'ln2_b': jnp.zeros((L, 1, d), jnp.float32),
        'w1': normal(ks[5], (L, d, inter), dtype=jnp.bfloat16),
        'b1': jnp.zeros((L, 1, inter), jnp.float32),
        'w2': normal(ks[6], (L, inter, d), dtype=jnp.bfloat16),
        'b2': jnp.zeros((L, 1, d), jnp.float32),
        'lambda_2': jnp.full((L, 1, d), LAYER_SCALE_INIT, jnp.float32),
    }


LAYER_PARAMS = ('ln1_g', 'ln1_b', 'wqkv', 'bqkv', 'wo', 'bo', 'rel_bias',
                'lambda_1', 'ln2_g', 'ln2_b', 'w1', 'b1', 'w2', 'b2', 'lambda_2')


# index maps for grid = (batch, layer)
def _im_patches(b, l):
    return (b, 0, 0)


def _im_const2(b, l):
    return (0, 0)


def _im_layer3(b, l):
    return (l, 0, 0)


def _im_layer4(b, l):
    return (l, 0, 0, 0)


def _im_out(b, l):
    return (b, 0, 0)


# ------------------------------ forward pass ----------------------------------
def beit_forward(images, params):
    bsz, c, him, wim = images.shape
    p = PATCH_SIZE
    hp, wp = him // p, wim // p

    # im2col (pure layout op, done once by XLA).
    # TODO(synk): BeitFeatureExtractor's bilinear resize to image_size is omitted;
    # inputs must already be (IMAGE_SIZE, IMAGE_SIZE).  The im2col gather could
    # also be folded into the kernel via an (hp, wp) BlockSpec index_map.
    patches = images.astype(jnp.float32).reshape(bsz, c, hp, p, wp, p)
    patches = patches.transpose(0, 2, 4, 1, 3, 5).reshape(bsz, hp * wp, c * p * p)

    in_specs = [
        pl.BlockSpec((None, NUM_PATCHES, CPP), _im_patches),   # patches (per image)
        pl.BlockSpec((CPP, HIDDEN), _im_const2),               # patch_w (fetched once)
        pl.BlockSpec((1, HIDDEN), _im_const2),                 # patch_b
        pl.BlockSpec((1, HIDDEN), _im_const2),                 # cls token
    ]
    for name in LAYER_PARAMS:
        arr = params[name]
        imap = _im_layer4 if arr.ndim == 4 else _im_layer3
        in_specs.append(pl.BlockSpec((None,) + arr.shape[1:], imap))

    feats = pl.pallas_call(
        _beit_fused_kernel,
        out_shape=jax.ShapeDtypeStruct((bsz, 1, HIDDEN), jnp.float32),
        grid_spec=pltpu.PrefetchScalarGridSpec(
            num_scalar_prefetch=0,
            grid=(bsz, NUM_LAYERS),
            in_specs=in_specs,
            out_specs=pl.BlockSpec((None, 1, HIDDEN), _im_out),
            scratch_shapes=[pltpu.VMEM((SEQ_PAD, HIDDEN), jnp.float32)]),
        compiler_params=pltpu.CompilerParams(
            dimension_semantics=("parallel", "arbitrary")),
    )(patches, params['patch_w'], params['patch_b'], params['cls'],
      *[params[name] for name in LAYER_PARAMS])

    return feats.reshape(bsz, HIDDEN)


# ------------------------------ main ------------------------------------------
if __name__ == "__main__":
    key = jax.random.PRNGKey(0)
    pkey, ikey = jax.random.split(key)
    params = init_params(pkey)
    images = jax.random.uniform(
        ikey, (2, NUM_CHANNELS, IMAGE_SIZE, IMAGE_SIZE), dtype=jnp.float32)

    feats = jax.jit(beit_forward)(images, params)
    feats = jax.block_until_ready(feats)

    assert feats.shape == (2, HIDDEN), feats.shape
    assert feats.dtype == jnp.float32
    assert bool(jnp.all(jnp.isfinite(feats)))
    print("KERNEL_OK")
</pallas_src>

<mosaic_0001>
module attributes {stable_mosaic.version = 11 : i64} {
  func.func @_beit_fused_kernel(%arg0: i32, %arg1: i32, %arg2: memref<1x16x192xf32, #tpu.memory_space<vmem>>, %arg3: memref<192x32xbf16, #tpu.memory_space<vmem>>, %arg4: memref<1x32xf32, #tpu.memory_space<vmem>>, %arg5: memref<1x32xf32, #tpu.memory_space<vmem>>, %arg6: memref<1x1x32xf32, #tpu.memory_space<vmem>>, %arg7: memref<1x1x32xf32, #tpu.memory_space<vmem>>, %arg8: memref<1x32x96xbf16, #tpu.memory_space<vmem>>, %arg9: memref<1x1x96xf32, #tpu.memory_space<vmem>>, %arg10: memref<1x32x32xbf16, #tpu.memory_space<vmem>>, %arg11: memref<1x1x32xf32, #tpu.memory_space<vmem>>, %arg12: memref<1x4x24x24xf32, #tpu.memory_space<vmem>>, %arg13: memref<1x1x32xf32, #tpu.memory_space<vmem>>, %arg14: memref<1x1x32xf32, #tpu.memory_space<vmem>>, %arg15: memref<1x1x32xf32, #tpu.memory_space<vmem>>, %arg16: memref<1x32x128xbf16, #tpu.memory_space<vmem>>, %arg17: memref<1x1x128xf32, #tpu.memory_space<vmem>>, %arg18: memref<1x128x32xbf16, #tpu.memory_space<vmem>>, %arg19: memref<1x1x32xf32, #tpu.memory_space<vmem>>, %arg20: memref<1x1x32xf32, #tpu.memory_space<vmem>>, %arg21: memref<1x1x32xf32, #tpu.memory_space<vmem>>, %arg22: memref<24x32xf32, #tpu.memory_space<vmem>>) attributes {dimension_semantics = [#tpu.dimension_semantics<parallel>, #tpu.dimension_semantics<arbitrary>], iteration_bounds = array<i64: 2, 12>, scalar_prefetch = 0 : i64, scratch_operands = 1 : i64, tpu.core_type = #tpu.core_type<tc>, window_params = [{transform_indices = @transform_0, window_bounds = array<i64: 1, 16, 192>}, {pipeline_mode = #tpu.pipeline_mode<synchronous>, transform_indices = @transform_1, window_bounds = array<i64: 192, 32>}, {pipeline_mode = #tpu.pipeline_mode<synchronous>, transform_indices = @transform_2, window_bounds = array<i64: 1, 32>}, {pipeline_mode = #tpu.pipeline_mode<synchronous>, transform_indices = @transform_3, window_bounds = array<i64: 1, 32>}, {transform_indices = @transform_4, window_bounds = array<i64: 1, 1, 32>}, {transform_indices = @transform_5, window_bounds = array<i64: 1, 1, 32>}, {transform_indices = @transform_6, window_bounds = array<i64: 1, 32, 96>}, {transform_indices = @transform_7, window_bounds = array<i64: 1, 1, 96>}, {transform_indices = @transform_8, window_bounds = array<i64: 1, 32, 32>}, {transform_indices = @transform_9, window_bounds = array<i64: 1, 1, 32>}, {transform_indices = @transform_10, window_bounds = array<i64: 1, 4, 24, 24>}, {transform_indices = @transform_11, window_bounds = array<i64: 1, 1, 32>}, {transform_indices = @transform_12, window_bounds = array<i64: 1, 1, 32>}, {transform_indices = @transform_13, window_bounds = array<i64: 1, 1, 32>}, {transform_indices = @transform_14, window_bounds = array<i64: 1, 32, 128>}, {transform_indices = @transform_15, window_bounds = array<i64: 1, 1, 128>}, {transform_indices = @transform_16, window_bounds = array<i64: 1, 128, 32>}, {transform_indices = @transform_17, window_bounds = array<i64: 1, 1, 32>}, {transform_indices = @transform_18, window_bounds = array<i64: 1, 1, 32>}, {transform_indices = @transform_19, window_bounds = array<i64: 1, 1, 32>}]} {
    %c0_i32 = arith.constant 0 : i32
    %0 = arith.cmpi eq, %arg1, %c0_i32 : i32
    %1 = arith.extui %0 : i1 to i32
    %c0_i32_0 = arith.constant 0 : i32
    %2 = arith.cmpi ne, %1, %c0_i32_0 : i32
    scf.if %2 {
      %c0_73 = arith.constant 0 : index
      %c0_74 = arith.constant 0 : index
      %c0_75 = arith.constant 0 : index
      %172 = vector.load %arg2[%c0_73, %c0_74, %c0_75] : memref<1x16x192xf32, #tpu.memory_space<vmem>>, vector<1x16x192xf32>
      %173 = vector.shape_cast %172 : vector<1x16x192xf32> to vector<16x192xf32>
      %cst_76 = arith.constant 2.000000e+00 : f32
      %174 = vector.broadcast %cst_76 : f32 to vector<16x192xf32>
      %175 = arith.mulf %173, %174 : vector<16x192xf32>
      %cst_77 = arith.constant 1.000000e+00 : f32
      %176 = vector.broadcast %cst_77 : f32 to vector<16x192xf32>
      %177 = arith.subf %175, %176 : vector<16x192xf32>
      %178 = arith.truncf %177 : vector<16x192xf32> to vector<16x192xbf16>
      %c0_78 = arith.constant 0 : index
      %c0_79 = arith.constant 0 : index
      %179 = vector.load %arg3[%c0_78, %c0_79] : memref<192x32xbf16, #tpu.memory_space<vmem>>, vector<192x32xbf16>
      %cst_80 = arith.constant dense<0.000000e+00> : vector<16x32xf32>
      %180 = tpu.matmul %178, %179, %cst_80 {dimension_numbers = #tpu.dot_dimension_numbers<[1], [0], [0], [1], [0, 0, 1, 1], [], []>} : vector<16x192xbf16>, vector<192x32xbf16>, vector<16x32xf32> -> vector<16x32xf32>
      %c0_81 = arith.constant 0 : index
      %c0_82 = arith.constant 0 : index
      %181 = vector.load %arg4[%c0_81, %c0_82] : memref<1x32xf32, #tpu.memory_space<vmem>>, vector<1x32xf32>
      %182 = vector.broadcast %181 : vector<1x32xf32> to vector<16x32xf32>
      %183 = arith.addf %180, %182 : vector<16x32xf32>
      %c0_83 = arith.constant 0 : index
      %c0_84 = arith.constant 0 : index
      %184 = vector.load %arg5[%c0_83, %c0_84] : memref<1x32xf32, #tpu.memory_space<vmem>>, vector<1x32xf32>
      %cst_85 = arith.constant 0.000000e+00 : f32
      %185 = vector.broadcast %cst_85 : f32 to vector<7x32xf32>
      %186 = tpu.concatenate %184, %183, %185 in 0 : vector<1x32xf32>, vector<16x32xf32>, vector<7x32xf32> -> vector<24x32xf32>
      %c0_86 = arith.constant 0 : index
      %c0_87 = arith.constant 0 : index
      %187 = vector.load %arg22[%c0_86, %c0_87] : memref<24x32xf32, #tpu.memory_space<vmem>>, vector<24x32xf32>
      tpu.vector_store %arg22[%c0_86, %c0_87], %186 {strides = array<i32>} : memref<24x32xf32, #tpu.memory_space<vmem>>, vector<24x32xf32>,
    } else {
    }
    %c0 = arith.constant 0 : index
    %c0_1 = arith.constant 0 : index
    %3 = vector.load %arg22[%c0, %c0_1] : memref<24x32xf32, #tpu.memory_space<vmem>>, vector<24x32xf32>
    %c0_2 = arith.constant 0 : index
    %c0_3 = arith.constant 0 : index
    %c0_4 = arith.constant 0 : index
    %4 = vector.load %arg6[%c0_2, %c0_3, %c0_4] : memref<1x1x32xf32, #tpu.memory_space<vmem>>, vector<1x1x32xf32>
    %5 = vector.shape_cast %4 : vector<1x1x32xf32> to vector<1x32xf32>
    %c0_5 = arith.constant 0 : index
    %c0_6 = arith.constant 0 : index
    %c0_7 = arith.constant 0 : index
    %6 = vector.load %arg7[%c0_5, %c0_6, %c0_7] : memref<1x1x32xf32, #tpu.memory_space<vmem>>, vector<1x1x32xf32>
    %7 = vector.shape_cast %6 : vector<1x1x32xf32> to vector<1x32xf32>
    %cst = arith.constant dense<0.000000e+00> : vector<24xf32>
    %8 = vector.multi_reduction <add>, %3, %cst [1] : vector<24x32xf32> to vector<24xf32>
    %9 = vector.shape_cast %8 : vector<24xf32> to vector<24x1xf32>
    %cst_8 = arith.constant 3.200000e+01 : f32
    %10 = vector.broadcast %cst_8 : f32 to vector<24x1xf32>
    %11 = arith.divf %9, %10 : vector<24x1xf32>
    %12 = vector.broadcast %11 : vector<24x1xf32> to vector<24x32xf32>
    %13 = arith.subf %3, %12 : vector<24x32xf32>
    %14 = arith.mulf %13, %13 : vector<24x32xf32>
    %cst_9 = arith.constant dense<0.000000e+00> : vector<24xf32>
    %15 = vector.multi_reduction <add>, %14, %cst_9 [1] : vector<24x32xf32> to vector<24xf32>
    %16 = vector.shape_cast %15 : vector<24xf32> to vector<24x1xf32>
    %cst_10 = arith.constant 3.200000e+01 : f32
    %17 = vector.broadcast %cst_10 : f32 to vector<24x1xf32>
    %18 = arith.divf %16, %17 : vector<24x1xf32>
    %19 = vector.broadcast %11 : vector<24x1xf32> to vector<24x32xf32>
    %20 = arith.subf %3, %19 : vector<24x32xf32>
    %cst_11 = arith.constant 9.99999996E-13 : f32
    %21 = vector.broadcast %cst_11 : f32 to vector<24x1xf32>
    %22 = arith.addf %18, %21 : vector<24x1xf32>
    %23 = math.rsqrt %22 : vector<24x1xf32>
    %24 = vector.broadcast %23 : vector<24x1xf32> to vector<24x32xf32>
    %25 = arith.mulf %20, %24 : vector<24x32xf32>
    %26 = vector.broadcast %5 : vector<1x32xf32> to vector<24x32xf32>
    %27 = arith.mulf %25, %26 : vector<24x32xf32>
    %28 = vector.broadcast %7 : vector<1x32xf32> to vector<24x32xf32>
    %29 = arith.addf %27, %28 : vector<24x32xf32>
    %30 = arith.truncf %29 : vector<24x32xf32> to vector<24x32xbf16>
    %c0_12 = arith.constant 0 : index
    %c0_13 = arith.constant 0 : index
    %c0_14 = arith.constant 0 : index
    %31 = vector.load %arg8[%c0_12, %c0_13, %c0_14] : memref<1x32x96xbf16, #tpu.memory_space<vmem>>, vector<1x32x96xbf16>
    %32 = vector.shape_cast %31 : vector<1x32x96xbf16> to vector<32x96xbf16>
    %cst_15 = arith.constant dense<0.000000e+00> : vector<24x96xf32>
    %33 = tpu.matmul %30, %32, %cst_15 {dimension_numbers = #tpu.dot_dimension_numbers<[1], [0], [0], [1], [0, 0, 1, 1], [], []>} : vector<24x32xbf16>, vector<32x96xbf16>, vector<24x96xf32> -> vector<24x96xf32>
    %c0_16 = arith.constant 0 : index
    %c0_17 = arith.constant 0 : index
    %c0_18 = arith.constant 0 : index
    %34 = vector.load %arg9[%c0_16, %c0_17, %c0_18] : memref<1x1x96xf32, #tpu.memory_space<vmem>>, vector<1x1x96xf32>
    %35 = vector.shape_cast %34 : vector<1x1x96xf32> to vector<1x96xf32>
    %36 = vector.broadcast %35 : vector<1x96xf32> to vector<24x96xf32>
    %37 = arith.addf %33, %36 : vector<24x96xf32>
    %38 = vector.extract_strided_slice %37 {offsets = [0, 0], sizes = [24, 8], strides = [1, 1]} : vector<24x96xf32> to vector<24x8xf32>
    %39 = vector.extract_strided_slice %37 {offsets = [0, 8], sizes = [24, 8], strides = [1, 1]} : vector<24x96xf32> to vector<24x8xf32>
    %40 = vector.extract_strided_slice %37 {offsets = [0, 16], sizes = [24, 8], strides = [1, 1]} : vector<24x96xf32> to vector<24x8xf32>
    %41 = vector.extract_strided_slice %37 {offsets = [0, 24], sizes = [24, 8], strides = [1, 1]} : vector<24x96xf32> to vector<24x8xf32>
    %42 = vector.shape_cast %38 : vector<24x8xf32> to vector<1x24x8xf32>
    %43 = vector.shape_cast %39 : vector<24x8xf32> to vector<1x24x8xf32>
    %44 = vector.shape_cast %40 : vector<24x8xf32> to vector<1x24x8xf32>
    %45 = vector.shape_cast %41 : vector<24x8xf32> to vector<1x24x8xf32>
    %46 = tpu.concatenate %42, %43, %44, %45 in 0 : vector<1x24x8xf32>, vector<1x24x8xf32>, vector<1x24x8xf32>, vector<1x24x8xf32> -> vector<4x24x8xf32>
    %47 = vector.extract_strided_slice %37 {offsets = [0, 32], sizes = [24, 8], strides = [1, 1]} : vector<24x96xf32> to vector<24x8xf32>
    %48 = vector.extract_strided_slice %37 {offsets = [0, 40], sizes = [24, 8], strides = [1, 1]} : vector<24x96xf32> to vector<24x8xf32>
    %49 = vector.extract_strided_slice %37 {offsets = [0, 48], sizes = [24, 8], strides = [1, 1]} : vector<24x96xf32> to vector<24x8xf32>
    %50 = vector.extract_strided_slice %37 {offsets = [0, 56], sizes = [24, 8], strides = [1, 1]} : vector<24x96xf32> to vector<24x8xf32>
    %51 = vector.shape_cast %47 : vector<24x8xf32> to vector<1x24x8xf32>
    %52 = vector.shape_cast %48 : vector<24x8xf32> to vector<1x24x8xf32>
    %53 = vector.shape_cast %49 : vector<24x8xf32> to vector<1x24x8xf32>
    %54 = vector.shape_cast %50 : vector<24x8xf32> to vector<1x24x8xf32>
    %55 = tpu.concatenate %51, %52, %53, %54 in 0 : vector<1x24x8xf32>, vector<1x24x8xf32>, vector<1x24x8xf32>, vector<1x24x8xf32> -> vector<4x24x8xf32>
    %56 = vector.extract_strided_slice %37 {offsets = [0, 64], sizes = [24, 8], strides = [1, 1]} : vector<24x96xf32> to vector<24x8xf32>
    %57 = vector.extract_strided_slice %37 {offsets = [0, 72], sizes = [24, 8], strides = [1, 1]} : vector<24x96xf32> to vector<24x8xf32>
    %58 = vector.extract_strided_slice %37 {offsets = [0, 80], sizes = [24, 8], strides = [1, 1]} : vector<24x96xf32> to vector<24x8xf32>
    %59 = vector.extract_strided_slice %37 {offsets = [0, 88], sizes = [24, 8], strides = [1, 1]} : vector<24x96xf32> to vector<24x8xf32>
    %60 = vector.shape_cast %56 : vector<24x8xf32> to vector<1x24x8xf32>
    %61 = vector.shape_cast %57 : vector<24x8xf32> to vector<1x24x8xf32>
    %62 = vector.shape_cast %58 : vector<24x8xf32> to vector<1x24x8xf32>
    %63 = vector.shape_cast %59 : vector<24x8xf32> to vector<1x24x8xf32>
    %64 = tpu.concatenate %60, %61, %62, %63 in 0 : vector<1x24x8xf32>, vector<1x24x8xf32>, vector<1x24x8xf32>, vector<1x24x8xf32> -> vector<4x24x8xf32>
    %65 = arith.truncf %46 : vector<4x24x8xf32> to vector<4x24x8xbf16>
    %66 = arith.truncf %55 : vector<4x24x8xf32> to vector<4x24x8xbf16>
    "tpu.trace_start"() <{level = 10 : i32, message = "hqc,hkc->hqk"}> : () -> ()
    %cst_19 = arith.constant dense<0.000000e+00> : vector<4x24x24xf32>
    %67 = tpu.matmul %65, %66, %cst_19 {dimension_numbers = #tpu.dot_dimension_numbers<[2], [2], [1], [1], [0, 0, 0, 1, 1, 1], [0], [0]>} : vector<4x24x8xbf16>, vector<4x24x8xbf16>, vector<4x24x24xf32> -> vector<4x24x24xf32>
    "tpu.trace_stop"() : () -> ()
    %cst_20 = arith.constant 0.353553385 : f32
    %68 = vector.broadcast %cst_20 : f32 to vector<4x24x24xf32>
    %69 = arith.mulf %67, %68 : vector<4x24x24xf32>
    %c0_21 = arith.constant 0 : index
    %c0_22 = arith.constant 0 : index
    %c0_23 = arith.constant 0 : index
    %c0_24 = arith.constant 0 : index
    %70 = vector.load %arg12[%c0_21, %c0_22, %c0_23, %c0_24] : memref<1x4x24x24xf32, #tpu.memory_space<vmem>>, vector<1x4x24x24xf32>
    %71 = vector.shape_cast %70 : vector<1x4x24x24xf32> to vector<4x24x24xf32>
    %72 = arith.addf %69, %71 : vector<4x24x24xf32>
    %cst_25 = arith.constant dense<0xFF800000> : vector<4x24xf32>
    %73 = vector.multi_reduction <maximumf>, %72, %cst_25 [2] : vector<4x24x24xf32> to vector<4x24xf32>
    %74 = vector.shape_cast %73 : vector<4x24xf32> to vector<4x24x1xf32>
    %75 = vector.broadcast %74 : vector<4x24x1xf32> to vector<4x24x24xf32>
    %76 = arith.subf %72, %75 : vector<4x24x24xf32>
    %77 = math.exp %76 : vector<4x24x24xf32>
    %cst_26 = arith.constant dense<0.000000e+00> : vector<4x24xf32>
    %78 = vector.multi_reduction <add>, %77, %cst_26 [2] : vector<4x24x24xf32> to vector<4x24xf32>
    %79 = vector.shape_cast %78 : vector<4x24xf32> to vector<4x24x1xf32>
    %80 = tpu.reciprocal %79 {approx = true} : vector<4x24x1xf32> -> vector<4x24x1xf32>
    %81 = vector.broadcast %80 : vector<4x24x1xf32> to vector<4x24x24xf32>
    %82 = arith.mulf %77, %81 : vector<4x24x24xf32>
    %83 = arith.truncf %82 : vector<4x24x24xf32> to vector<4x24x24xbf16>
    %84 = arith.truncf %64 : vector<4x24x8xf32> to vector<4x24x8xbf16>
    "tpu.trace_start"() <{level = 10 : i32, message = "hqk,hkc->hqc"}> : () -> ()
    %cst_27 = arith.constant dense<0.000000e+00> : vector<4x24x8xf32>
    %85 = tpu.matmul %83, %84, %cst_27 {dimension_numbers = #tpu.dot_dimension_numbers<[2], [1], [1], [2], [0, 0, 0, 1, 1, 2], [0], [0]>} : vector<4x24x24xbf16>, vector<4x24x8xbf16>, vector<4x24x8xf32> -> vector<4x24x8xf32>
    "tpu.trace_stop"() : () -> ()
    %86 = vector.extract_strided_slice %85 {offsets = [0, 0, 0], sizes = [1, 24, 8], strides = [1, 1, 1]} : vector<4x24x8xf32> to vector<1x24x8xf32>
    %87 = vector.shape_cast %86 : vector<1x24x8xf32> to vector<24x8xf32>
    %88 = vector.extract_strided_slice %85 {offsets = [1, 0, 0], sizes = [1, 24, 8], strides = [1, 1, 1]} : vector<4x24x8xf32> to vector<1x24x8xf32>
    %89 = vector.shape_cast %88 : vector<1x24x8xf32> to vector<24x8xf32>
    %90 = vector.extract_strided_slice %85 {offsets = [2, 0, 0], sizes = [1, 24, 8], strides = [1, 1, 1]} : vector<4x24x8xf32> to vector<1x24x8xf32>
    %91 = vector.shape_cast %90 : vector<1x24x8xf32> to vector<24x8xf32>
    %92 = vector.extract_strided_slice %85 {offsets = [3, 0, 0], sizes = [1, 24, 8], strides = [1, 1, 1]} : vector<4x24x8xf32> to vector<1x24x8xf32>
    %93 = vector.shape_cast %92 : vector<1x24x8xf32> to vector<24x8xf32>
    %94 = tpu.concatenate %87, %89, %91, %93 in 1 : vector<24x8xf32>, vector<24x8xf32>, vector<24x8xf32>, vector<24x8xf32> -> vector<24x32xf32>
    %95 = arith.truncf %94 : vector<24x32xf32> to vector<24x32xbf16>
    %c0_28 = arith.constant 0 : index
    %c0_29 = arith.constant 0 : index
    %c0_30 = arith.constant 0 : index
    %96 = vector.load %arg10[%c0_28, %c0_29, %c0_30] : memref<1x32x32xbf16, #tpu.memory_space<vmem>>, vector<1x32x32xbf16>
    %97 = vector.shape_cast %96 : vector<1x32x32xbf16> to vector<32x32xbf16>
    %cst_31 = arith.constant dense<0.000000e+00> : vector<24x32xf32>
    %98 = tpu.matmul %95, %97, %cst_31 {dimension_numbers = #tpu.dot_dimension_numbers<[1], [0], [0], [1], [0, 0, 1, 1], [], []>} : vector<24x32xbf16>, vector<32x32xbf16>, vector<24x32xf32> -> vector<24x32xf32>
    %c0_32 = arith.constant 0 : index
    %c0_33 = arith.constant 0 : index
    %c0_34 = arith.constant 0 : index
    %99 = vector.load %arg11[%c0_32, %c0_33, %c0_34] : memref<1x1x32xf32, #tpu.memory_space<vmem>>, vector<1x1x32xf32>
    %100 = vector.shape_cast %99 : vector<1x1x32xf32> to vector<1x32xf32>
    %101 = vector.broadcast %100 : vector<1x32xf32> to vector<24x32xf32>
    %102 = arith.addf %98, %101 : vector<24x32xf32>
    %c0_35 = arith.constant 0 : index
    %c0_36 = arith.constant 0 : index
    %c0_37 = arith.constant 0 : index
    %103 = vector.load %arg13[%c0_35, %c0_36, %c0_37] : memref<1x1x32xf32, #tpu.memory_space<vmem>>, vector<1x1x32xf32>
    %104 = vector.shape_cast %103 : vector<1x1x32xf32> to vector<1x32xf32>
    %105 = vector.broadcast %104 : vector<1x32xf32> to vector<24x32xf32>
    %106 = arith.mulf %105, %102 : vector<24x32xf32>
    %107 = arith.addf %3, %106 : vector<24x32xf32>
    %c0_38 = arith.constant 0 : index
    %c0_39 = arith.constant 0 : index
    %c0_40 = arith.constant 0 : index
    %108 = vector.load %arg14[%c0_38, %c0_39, %c0_40] : memref<1x1x32xf32, #tpu.memory_space<vmem>>, vector<1x1x32xf32>
    %109 = vector.shape_cast %108 : vector<1x1x32xf32> to vector<1x32xf32>
    %c0_41 = arith.constant 0 : index
    %c0_42 = arith.constant 0 : index
    %c0_43 = arith.constant 0 : index
    %110 = vector.load %arg15[%c0_41, %c0_42, %c0_43] : memref<1x1x32xf32, #tpu.memory_space<vmem>>, vector<1x1x32xf32>
    %111 = vector.shape_cast %110 : vector<1x1x32xf32> to vector<1x32xf32>
    %cst_44 = arith.constant dense<0.000000e+00> : vector<24xf32>
    %112 = vector.multi_reduction <add>, %107, %cst_44 [1] : vector<24x32xf32> to vector<24xf32>
    %113 = vector.shape_cast %112 : vector<24xf32> to vector<24x1xf32>
    %cst_45 = arith.constant 3.200000e+01 : f32
    %114 = vector.broadcast %cst_45 : f32 to vector<24x1xf32>
    %115 = arith.divf %113, %114 : vector<24x1xf32>
    %116 = vector.broadcast %115 : vector<24x1xf32> to vector<24x32xf32>
    %117 = arith.subf %107, %116 : vector<24x32xf32>
    %118 = arith.mulf %117, %117 : vector<24x32xf32>
    %cst_46 = arith.constant dense<0.000000e+00> : vector<24xf32>
    %119 = vector.multi_reduction <add>, %118, %cst_46 [1] : vector<24x32xf32> to vector<24xf32>
    %120 = vector.shape_cast %119 : vector<24xf32> to vector<24x1xf32>
    %cst_47 = arith.constant 3.200000e+01 : f32
    %121 = vector.broadcast %cst_47 : f32 to vector<24x1xf32>
    %122 = arith.divf %120, %121 : vector<24x1xf32>
    %123 = vector.broadcast %115 : vector<24x1xf32> to vector<24x32xf32>
    %124 = arith.subf %107, %123 : vector<24x32xf32>
    %cst_48 = arith.constant 9.99999996E-13 : f32
    %125 = vector.broadcast %cst_48 : f32 to vector<24x1xf32>
    %126 = arith.addf %122, %125 : vector<24x1xf32>
    %127 = math.rsqrt %126 : vector<24x1xf32>
    %128 = vector.broadcast %127 : vector<24x1xf32> to vector<24x32xf32>
    %129 = arith.mulf %124, %128 : vector<24x32xf32>
    %130 = vector.broadcast %109 : vector<1x32xf32> to vector<24x32xf32>
    %131 = arith.mulf %129, %130 : vector<24x32xf32>
    %132 = vector.broadcast %111 : vector<1x32xf32> to vector<24x32xf32>
    %133 = arith.addf %131, %132 : vector<24x32xf32>
    %134 = arith.truncf %133 : vector<24x32xf32> to vector<24x32xbf16>
    %c0_49 = arith.constant 0 : index
    %c0_50 = arith.constant 0 : index
    %c0_51 = arith.constant 0 : index
    %135 = vector.load %arg16[%c0_49, %c0_50, %c0_51] : memref<1x32x128xbf16, #tpu.memory_space<vmem>>, vector<1x32x128xbf16>
    %136 = vector.shape_cast %135 : vector<1x32x128xbf16> to vector<32x128xbf16>
    %cst_52 = arith.constant dense<0.000000e+00> : vector<24x128xf32>
    %137 = tpu.matmul %134, %136, %cst_52 {dimension_numbers = #tpu.dot_dimension_numbers<[1], [0], [0], [1], [0, 0, 1, 1], [], []>} : vector<24x32xbf16>, vector<32x128xbf16>, vector<24x128xf32> -> vector<24x128xf32>
    %c0_53 = arith.constant 0 : index
    %c0_54 = arith.constant 0 : index
    %c0_55 = arith.constant 0 : index
    %138 = vector.load %arg17[%c0_53, %c0_54, %c0_55] : memref<1x1x128xf32, #tpu.memory_space<vmem>>, vector<1x1x128xf32>
    %139 = vector.shape_cast %138 : vector<1x1x128xf32> to vector<1x128xf32>
    %140 = vector.broadcast %139 : vector<1x128xf32> to vector<24x128xf32>
    %141 = arith.addf %137, %140 : vector<24x128xf32>
    %142 = arith.mulf %141, %141 : vector<24x128xf32>
    %143 = arith.mulf %141, %142 : vector<24x128xf32>
    %cst_56 = arith.constant 4.471500e-02 : f32
    %144 = vector.broadcast %cst_56 : f32 to vector<24x128xf32>
    %145 = arith.mulf %144, %143 : vector<24x128xf32>
    %146 = arith.addf %141, %145 : vector<24x128xf32>
    %cst_57 = arith.constant 0.797884583 : f32
    %147 = vector.broadcast %cst_57 : f32 to vector<24x128xf32>
    %148 = arith.mulf %147, %146 : vector<24x128xf32>
    %149 = math.tanh %148 : vector<24x128xf32>
    %cst_58 = arith.constant 1.000000e+00 : f32
    %150 = vector.broadcast %cst_58 : f32 to vector<24x128xf32>
    %151 = arith.addf %150, %149 : vector<24x128xf32>
    %cst_59 = arith.constant 5.000000e-01 : f32
    %152 = vector.broadcast %cst_59 : f32 to vector<24x128xf32>
    %153 = arith.mulf %152, %151 : vector<24x128xf32>
    %154 = arith.mulf %141, %153 : vector<24x128xf32>
    %155 = arith.truncf %154 : vector<24x128xf32> to vector<24x128xbf16>
    %c0_60 = arith.constant 0 : index
    %c0_61 = arith.constant 0 : index
    %c0_62 = arith.constant 0 : index
    %156 = vector.load %arg18[%c0_60, %c0_61, %c0_62] : memref<1x128x32xbf16, #tpu.memory_space<vmem>>, vector<1x128x32xbf16>
    %157 = vector.shape_cast %156 : vector<1x128x32xbf16> to vector<128x32xbf16>
    %cst_63 = arith.constant dense<0.000000e+00> : vector<24x32xf32>
    %158 = tpu.matmul %155, %157, %cst_63 {dimension_numbers = #tpu.dot_dimension_numbers<[1], [0], [0], [1], [0, 0, 1, 1], [], []>} : vector<24x128xbf16>, vector<128x32xbf16>, vector<24x32xf32> -> vector<24x32xf32>
    %c0_64 = arith.constant 0 : index
    %c0_65 = arith.constant 0 : index
    %c0_66 = arith.constant 0 : index
    %159 = vector.load %arg19[%c0_64, %c0_65, %c0_66] : memref<1x1x32xf32, #tpu.memory_space<vmem>>, vector<1x1x32xf32>
    %160 = vector.shape_cast %159 : vector<1x1x32xf32> to vector<1x32xf32>
    %161 = vector.broadcast %160 : vector<1x32xf32> to vector<24x32xf32>
    %162 = arith.addf %158, %161 : vector<24x32xf32>
    %c0_67 = arith.constant 0 : index
    %c0_68 = arith.constant 0 : index
    %c0_69 = arith.constant 0 : index
    %163 = vector.load %arg20[%c0_67, %c0_68, %c0_69] : memref<1x1x32xf32, #tpu.memory_space<vmem>>, vector<1x1x32xf32>
    %164 = vector.shape_cast %163 : vector<1x1x32xf32> to vector<1x32xf32>
    %165 = vector.broadcast %164 : vector<1x32xf32> to vector<24x32xf32>
    %166 = arith.mulf %165, %162 : vector<24x32xf32>
    %167 = arith.addf %107, %166 : vector<24x32xf32>
    %c0_70 = arith.constant 0 : index
    %c0_71 = arith.constant 0 : index
    %168 = vector.load %arg22[%c0_70, %c0_71] : memref<24x32xf32, #tpu.memory_space<vmem>>, vector<24x32xf32>
    tpu.vector_store %arg22[%c0_70, %c0_71], %167 {strides = array<i32>} : memref<24x32xf32, #tpu.memory_space<vmem>>, vector<24x32xf32>,
    %c11_i32 = arith.constant 11 : i32
    %169 = arith.cmpi eq, %arg1, %c11_i32 : i32
    %170 = arith.extui %169 : i1 to i32
    %c0_i32_72 = arith.constant 0 : i32
    %171 = arith.cmpi ne, %170, %c0_i32_72 : i32
    scf.if %171 {
      %172 = vector.extract_strided_slice %167 {offsets = [1, 0], sizes = [16, 32], strides = [1, 1]} : vector<24x32xf32> to vector<16x32xf32>
      %cst_73 = arith.constant dense<0.000000e+00> : vector<32xf32>
      %173 = vector.multi_reduction <add>, %172, %cst_73 [0] : vector<16x32xf32> to vector<32xf32>
      %174 = vector.shape_cast %173 : vector<32xf32> to vector<1x32xf32>
      %cst_74 = arith.constant 1.600000e+01 : f32
      %175 = vector.broadcast %cst_74 : f32 to vector<1x32xf32>
      %176 = arith.divf %174, %175 : vector<1x32xf32>
      %c0_75 = arith.constant 0 : index
      %c0_76 = arith.constant 0 : index
      %c0_77 = arith.constant 0 : index
      %177 = vector.load %arg21[%c0_75, %c0_76, %c0_77] : memref<1x1x32xf32, #tpu.memory_space<vmem>>, vector<1x1x32xf32>
      %178 = vector.shape_cast %177 : vector<1x1x32xf32> to vector<1x32xf32>
      %179 = vector.shape_cast %176 : vector<1x32xf32> to vector<1x1x32xf32>
      tpu.vector_store %arg21[%c0_75, %c0_76, %c0_77], %179 {strides = array<i32>} : memref<1x1x32xf32, #tpu.memory_space<vmem>>, vector<1x1x32xf32>,
    } else {
    }
    return
  }
  func.func @transform_0(%arg0: i32, %arg1: i32) -> (i32, i32, i32) {
    %c0_i32 = arith.constant 0 : i32
    %c0_i32_0 = arith.constant 0 : i32
    %c0_i32_1 = arith.constant 0 : i32
    return %arg0, %c0_i32, %c0_i32_0 : i32, i32, i32
  }
  func.func @transform_1(%arg0: i32, %arg1: i32) -> (i32, i32) {
    %c0_i32 = arith.constant 0 : i32
    %c0_i32_0 = arith.constant 0 : i32
    %c0_i32_1 = arith.constant 0 : i32
    return %c0_i32, %c0_i32_0 : i32, i32
  }
  func.func @transform_2(%arg0: i32, %arg1: i32) -> (i32, i32) {
    %c0_i32 = arith.constant 0 : i32
    %c0_i32_0 = arith.constant 0 : i32
    %c0_i32_1 = arith.constant 0 : i32
    return %c0_i32, %c0_i32_0 : i32, i32
  }
  func.func @transform_3(%arg0: i32, %arg1: i32) -> (i32, i32) {
    %c0_i32 = arith.constant 0 : i32
    %c0_i32_0 = arith.constant 0 : i32
    %c0_i32_1 = arith.constant 0 : i32
    return %c0_i32, %c0_i32_0 : i32, i32
  }
  func.func @transform_4(%arg0: i32, %arg1: i32) -> (i32, i32, i32) {
    %c0_i32 = arith.constant 0 : i32
    %c0_i32_0 = arith.constant 0 : i32
    %c0_i32_1 = arith.constant 0 : i32
    return %arg1, %c0_i32, %c0_i32_0 : i32, i32, i32
  }
  func.func @transform_5(%arg0: i32, %arg1: i32) -> (i32, i32, i32) {
    %c0_i32 = arith.constant 0 : i32
    %c0_i32_0 = arith.constant 0 : i32
    %c0_i32_1 = arith.constant 0 : i32
    return %arg1, %c0_i32, %c0_i32_0 : i32, i32, i32
  }
  func.func @transform_6(%arg0: i32, %arg1: i32) -> (i32, i32, i32) {
    %c0_i32 = arith.constant 0 : i32
    %c0_i32_0 = arith.constant 0 : i32
    %c0_i32_1 = arith.constant 0 : i32
    return %arg1, %c0_i32, %c0_i32_0 : i32, i32, i32
  }
  func.func @transform_7(%arg0: i32, %arg1: i32) -> (i32, i32, i32) {
    %c0_i32 = arith.constant 0 : i32
    %c0_i32_0 = arith.constant 0 : i32
    %c0_i32_1 = arith.constant 0 : i32
    return %arg1, %c0_i32, %c0_i32_0 : i32, i32, i32
  }
  func.func @transform_8(%arg0: i32, %arg1: i32) -> (i32, i32, i32) {
    %c0_i32 = arith.constant 0 : i32
    %c0_i32_0 = arith.constant 0 : i32
    %c0_i32_1 = arith.constant 0 : i32
    return %arg1, %c0_i32, %c0_i32_0 : i32, i32, i32
  }
  func.func @transform_9(%arg0: i32, %arg1: i32) -> (i32, i32, i32) {
    %c0_i32 = arith.constant 0 : i32
    %c0_i32_0 = arith.constant 0 : i32
    %c0_i32_1 = arith.constant 0 : i32
    return %arg1, %c0_i32, %c0_i32_0 : i32, i32, i32
  }
  func.func @transform_10(%arg0: i32, %arg1: i32) -> (i32, i32, i32, i32) {
    %c0_i32 = arith.constant 0 : i32
    %c0_i32_0 = arith.constant 0 : i32
    %c0_i32_1 = arith.constant 0 : i32
    %c0_i32_2 = arith.constant 0 : i32
    return %arg1, %c0_i32, %c0_i32_0, %c0_i32_1 : i32, i32, i32, i32
  }
  func.func @transform_11(%arg0: i32, %arg1: i32) -> (i32, i32, i32) {
    %c0_i32 = arith.constant 0 : i32
    %c0_i32_0 = arith.constant 0 : i32
    %c0_i32_1 = arith.constant 0 : i32
    return %arg1, %c0_i32, %c0_i32_0 : i32, i32, i32
  }
  func.func @transform_12(%arg0: i32, %arg1: i32) -> (i32, i32, i32) {
    %c0_i32 = arith.constant 0 : i32
    %c0_i32_0 = arith.constant 0 : i32
    %c0_i32_1 = arith.constant 0 : i32
    return %arg1, %c0_i32, %c0_i32_0 : i32, i32, i32
  }
  func.func @transform_13(%arg0: i32, %arg1: i32) -> (i32, i32, i32) {
    %c0_i32 = arith.constant 0 : i32
    %c0_i32_0 = arith.constant 0 : i32
    %c0_i32_1 = arith.constant 0 : i32
    return %arg1, %c0_i32, %c0_i32_0 : i32, i32, i32
  }
  func.func @transform_14(%arg0: i32, %arg1: i32) -> (i32, i32, i32) {
    %c0_i32 = arith.constant 0 : i32
    %c0_i32_0 = arith.constant 0 : i32
    %c0_i32_1 = arith.constant 0 : i32
    return %arg1, %c0_i32, %c0_i32_0 : i32, i32, i32
  }
  func.func @transform_15(%arg0: i32, %arg1: i32) -> (i32, i32, i32) {
    %c0_i32 = arith.constant 0 : i32
    %c0_i32_0 = arith.constant 0 : i32
    %c0_i32_1 = arith.constant 0 : i32
    return %arg1, %c0_i32, %c0_i32_0 : i32, i32, i32
  }
  func.func @transform_16(%arg0: i32, %arg1: i32) -> (i32, i32, i32) {
    %c0_i32 = arith.constant 0 : i32
    %c0_i32_0 = arith.constant 0 : i32
    %c0_i32_1 = arith.constant 0 : i32
    return %arg1, %c0_i32, %c0_i32_0 : i32, i32, i32
  }
  func.func @transform_17(%arg0: i32, %arg1: i32) -> (i32, i32, i32) {
    %c0_i32 = arith.constant 0 : i32
    %c0_i32_0 = arith.constant 0 : i32
    %c0_i32_1 = arith.constant 0 : i32
    return %arg1, %c0_i32, %c0_i32_0 : i32, i32, i32
  }
  func.func @transform_18(%arg0: i32, %arg1: i32) -> (i32, i32, i32) {
    %c0_i32 = arith.constant 0 : i32
    %c0_i32_0 = arith.constant 0 : i32
    %c0_i32_1 = arith.constant 0 : i32
    return %arg1, %c0_i32, %c0_i32_0 : i32, i32, i32
  }
  func.func @transform_19(%arg0: i32, %arg1: i32) -> (i32, i32, i32) {
    %c0_i32 = arith.constant 0 : i32
    %c0_i32_0 = arith.constant 0 : i32
    %c0_i32_1 = arith.constant 0 : i32
    return %arg0, %c0_i32, %c0_i32_0 : i32, i32, i32
  }
}

</mosaic_0001>

<bundles_post_ra>
// kernel: beit_forward.1
= control target key start
LH: loop header
LB: loop body
LE: loop exit
PB: predicated region body
PF: predicated region fallthrough
CT: control target
= control target key end

     0   :  { %s3866_s0 = inlined_call_operand.vmem [shape: f32[2,16,192], index: 0, kind: input, shape index: {}]   ;;  %s3867_s1 = inlined_call_operand.vmem [shape: bf16[192,32], index: 1, kind: input, shape index: {}]   ;;  %s3868_s2 = inlined_call_operand.vmem [shape: f32[1,32], index: 2, kind: input, shape index: {}]   ;;  %s3869_s3 = inlined_call_operand.vmem [shape: f32[1,32], index: 3, kind: input, shape index: {}]   ;;  %s3870_s4 = inlined_call_operand.vmem [shape: f32[12,1,32], index: 4, kind: input, shape index: {}]   ;;  %s3871_s5 = inlined_call_operand.vmem [shape: f32[12,1,32], index: 5, kind: input, shape index: {}]   ;;  %s3872_s6 = inlined_call_operand.vmem [shape: bf16[12,32,96], index: 6, kind: input, shape index: {}]   ;;  %s3873_s7 = inlined_call_operand.vmem [shape: f32[12,1,96], index: 7, kind: input, shape index: {}]   ;;  %s3874_s8 = inlined_call_operand.vmem [shape: bf16[12,32,32], index: 8, kind: input, shape index: {}]   ;;  %s3875_s9 = inlined_call_operand.vmem [shape: f32[12,1,32], index: 9, kind: input, shape index: {}]   ;;  %s3876_s10 = inlined_call_operand.vmem [shape: f32[12,4,24,24], index: 10, kind: input, shape index: {}]   ;;  %s3877_s11 = inlined_call_operand.vmem [shape: f32[12,1,32], index: 11, kind: input, shape index: {}]   ;;  %s3878_s12 = inlined_call_operand.vmem [shape: f32[12,1,32], index: 12, kind: input, shape index: {}]   ;;  %s3879_s13 = inlined_call_operand.vmem [shape: f32[12,1,32], index: 13, kind: input, shape index: {}]   ;;  %s3880_s14 = inlined_call_operand.vmem [shape: bf16[12,32,128], index: 14, kind: input, shape index: {}]   ;;  %s3881_s15 = inlined_call_operand.vmem [shape: f32[12,1,128], index: 15, kind: input, shape index: {}]   ;;  %s3882_s16 = inlined_call_operand.vmem [shape: bf16[12,128,32], index: 16, kind: input, shape index: {}]   ;;  %s3883_s17 = inlined_call_operand.vmem [shape: f32[12,1,32], index: 17, kind: input, shape index: {}]   ;;  %s3884_s18 = inlined_call_operand.vmem [shape: f32[12,1,32], index: 18, kind: input, shape index: {}]   ;;  %s3885_s19 = inlined_call_operand.hbm [shape: f32[2,1,32], index: 19, kind: output, shape index: {}]  }
   0x1   :  { %3901 = sst [smem:[#allocation19_spill]] %s3866_s0 }
   0x2   :  { %3902 = sst [smem:[#allocation20_spill]] %s3867_s1 }
   0x3   :  { %3903 = sst [smem:[#allocation21_spill]] %s3868_s2 }
   0x4   :  { %3904 = sst [smem:[#allocation22_spill]] %s3869_s3 }
   0x5   :  { %3905 = sst [smem:[#allocation23_spill]] %s3870_s4 }
   0x6   :  { %3906 = sst [smem:[#allocation24_spill]] %s3871_s5 }
   0x7   :  { %3907 = sst [smem:[#allocation25_spill]] %s3872_s6 }
   0x8   :  { %3908 = sst [smem:[#allocation26_spill]] %s3874_s8 }
   0x9   :  { %3909 = sst [smem:[#allocation27_spill]] %s3876_s10 }
   0xa   :  { %3910 = sst [smem:[#allocation28_spill]] %s3880_s14 }
   0xb   :  { %3911 = sst [smem:[#allocation29_spill]] %s3884_s18 }
   0xc   :  { %3912 = sst [smem:[#allocation30_spill]] %s3885_s19 }
   0xd   :  { %24 = vsyncpa [#allocation4], 0 }
   0xe   :  { %26 = vsyncpa [#allocation4 + $0x1], 0  ;;  %s3278_s0 = smov 0   ;;  %s3280_s30 = smov 0  }
   0xf   :  { %s3282_s20 = smov 0   ;;  %s3284_s21 = smov 0  }
  0x10   :  { %s3286_s1 = smov 0   ;;  %s3288_s22 = smov 0  }
  0x11   :  { %s3290_s2 = smov 0   ;;  %s3292_s23 = smov 0  }
  0x12 LB: > { %3913 = sst [smem:[#allocation6_spill]] %s3138_s0  ;;  %s2604_s24 = sadd.s32 4294967295, %s3166_s23   ;;  %s3166_s23 = sphi %s3292_s23, %s32_s23   ;;  %s3162_s2 = sphi %s3290_s2, %s3966_s2   ;;  %s3158_s22 = sphi %s3288_s22, %s3965_s22   ;;  %s3154_s1 = sphi %s3286_s1, %s3964_s1   ;;  %s3150_s21 = sphi %s3284_s21, %s3963_s21   ;;  %s3146_s20 = sphi %s3282_s20, %s3962_s20   ;;  %s3142_s30 = sphi %s3280_s30, %s3968_s30   ;;  %s3138_s0 = sphi %s3278_s0, %s3967_s0  }
  0x13   : > { %3914 = sst [smem:[#allocation7_spill]] %s3146_s20  ;;  %s2605_s25 = sadd.s32 4294967294, %s3166_s23  }
  0x14   : > { %3915 = sst [smem:[#allocation8_spill]] %s3150_s21  ;;  %s41_s3 = sadd.s32 1, %s3158_s22 }
  0x15   : > { %3916 = sst [smem:[#allocation9_spill]] %s3154_s1  ;;  %p42_p0 = scmp.ge.s32.totalorder %s41_s3, 12 }
  0x16   : > { %3917 = sst [smem:[#allocation10_spill]] %s3158_s22  ;;  %s44_s26 = sadd.s32 1, %s3162_s2 }
  0x17   : > { %3918 = sst [smem:[#allocation11_spill]] %s3162_s2  ;;  %p540_p1 = scmp.ne.s32.totalorder %s3146_s20, %s3142_s30 }
  0x18   : > { %3919 = sst [smem:[#allocation12_spill]] %s3166_s23  ;;  %p541_p2 = scmp.eq.s32.totalorder %s2604_s24, 23 }
  0x19   : > { %s3970_s3 = smov (%p42_p0, %s41_s3), 0  ;;  %s3972_s26 = smov (!%p42_p0, %s44_s26), %s3162_s2 }
  0x1a   : > { %3920 = sst [smem:[#allocation13_spill]] %s3970_s3  ;;  %p3327_p3 = por %p541_p2, %p540_p1 }
  0x1b   : > { %p546_p4 = scmp.ne.s32.totalorder %s3142_s30, %s3138_s0  ;;  %p46_p5 = scmp.ge.s32.totalorder %s3972_s26, 2 }
  0x1c   : > { %s3921_s27 = scalar_select %p3327_p3, 1, 0 }
  0x1d   : > { %p547_p6 = scmp.eq.s32.totalorder %s2605_s25, 23  ;;  %p2608_p7 = scmp.ge.s32.totalorder %s3166_s23, 1 }
  0x1e   : > { %3922 = sst [smem:[#allocation14_spill]] %s3921_s27  ;;  %p682_p8 = scmp.lt.s32.totalorder %s3166_s23, 25 }
  0x1f   : > { %s3974_s26 = smov (%p46_p5, %s3972_s26), 0  ;;  %p3337_p9 = por %p547_p6, %p546_p4 }
  0x20   : > { %3923 = sst [smem:[#allocation15_spill]] %s3974_s26  ;;  %p683_p10 = pnand %p2608_p7, %p682_p8 }
  0x21   : > { %s3924_s28 = scalar_select %p3337_p9, 1, 0 }
  0x22   : > { %s527_s29 = ssub.s32 %s3162_s2, %s3974_s26  ;;  %s530_s24 = sadd.s32 1, %s3146_s20 }
  0x23   : > { %3925 = sst [smem:[#allocation16_spill]] %s3924_s28  ;;  %p528_p11 = scmp.eq.s32.totalorder %s527_s29, 0 }
  0x24   : > { %686 = sbr.rel (%p683_p10) target bundleno = 2959 (0xb8f), region = 96 }
  0x25   : > { %s3345_s3 = scalar_select %p528_p11, %s3146_s20, %s530_s24  }
  0x27   : > { %3926 = sst [smem:[#allocation17_spill]] %s3345_s3 }
  0x29   : > { %p792_p12 = scmp.lt.s32.totalorder %s3154_s1, 1  ;;  %p797_p13 = scmp.lt.s32.totalorder %s3150_s21, 11 }
  0x2a   : > { %s3927_s2 = sld [smem:[#allocation19_spill]] }
  0x2b   : > { %s793_s22 = scalar_select %p792_p12, %s3154_s1, 1 }
  0x2c   : > { %s3352_s0 = scalar_select %p797_p13, %s3150_s21, 11 }
  0x2d   : > { %s2689_s29 = sshll.u32 %s793_s22, 5  ;;  %s3930_s6 = sld [smem:[#allocation25_spill]] }
  0x2e   : > { %s2690_s1 = sshll.u32 %s3352_s0, 4  ;;  %s3932_s8 = sld [smem:[#allocation26_spill]] }
  0x2f   : > { %s2868_s28 = smul.u32 96, %s3352_s0  ;;  %s3933_s10 = sld [smem:[#allocation27_spill]] }
  0x30   : > { %s3357_s25 = scalar_lea.vmem %s3927_s2, %s2689_s29  ;;  %s3934_s14 = sld [smem:[#allocation28_spill]] }
  0x33   : > { %s3371_s22 = scalar_lea.vmem %s3930_s6, %s2690_s1  ;;  %s2693_s6 = sshll.u32 %s3352_s0, 6 }
  0x34   : > { %3931 = sst [smem:[#allocation18_spill]] %s3371_s22  ;;  %s3380_s3 = scalar_lea.vmem %s3932_s8, %s2690_s1 }
  0x35   : > { %s3402_s8 = scalar_lea.vmem %s3933_s10, %s2868_s28  ;;  %s3417_s26 = scalar_lea.vmem %s3882_s16, %s2693_s6 }
  0x36   : > { %s3407_s27 = scalar_lea.vmem %s3934_s14, %s2690_s1  ;;  %s848_s28 = scalar_lea.vmem %s3883_s17, %s3352_s0 }
  0x37   : > { %s3935_s10 = sld [smem:[#allocation29_spill]]  ;;  %s3936_s1 = sand.u32 1, %s3142_s30  }
  0x38   : > { %s3429_s23 = scalar_lea.vmem [#allocation3], %s3936_s1  ;;  %s3937_s14 = sld [smem:[#allocation8_spill]] }
  0x3d   : > { %s851_s19 = scalar_lea.vmem %s3935_s10, %s3352_s0 }
  0x3e   : > { %p2620_p0 = scmp.ne.s32.totalorder %s3937_s14, 0 }
  0x3f   : > { %s3938_s18 = sld [smem:[#allocation20_spill]] (!%p2620_p0) }
  0x40   : > { %856 = sbr.rel (%p2620_p0) target bundleno = 321 (0x141), region = 100  ;;  %s3939_s5 = sld [smem:[#allocation21_spill]] (!%p2620_p0) }
  0x41   : > { %s3940_s10 = sld [smem:[#allocation22_spill]] (!%p2620_p0) }
  0x45   : > { %v2949_v0 = vld [vmem:[%s3938_s18 + $0x38] sm:$0xff]   ;;  %v3168_v1 = vmov 0   ;;  %v2950_v2 = vld [vmem:[%s3938_s18 + $0x30] sm:$0xff]   ;;  %v2951_v3 = vld [vmem:[%s3938_s18 + $0x28] sm:$0xff]   ;;  %vm974_vm0 = vcmask 523264   ;;  %vm1022_vm1 = vcmask 1040384  }
  0x46   : > { %978 = vmatprep.subr.bf16.mxu0 %v3168_v1  ;;  %v2952_v4 = vld [vmem:[%s3938_s18 + $0x20] sm:$0xff]   ;;  %v858_v5 = vld [vmem:[%s3357_s25 + $0x8] sm:$0xff]  ;;  %v860_v6 = vld [vmem:[%s3357_s25 + $0x18] sm:$0xff]  ;;  %vm1031_vm2 = vcmask 261120  }
  0x47   : > { %979 = vmatpush1.bf16.msra.mxu0 %v2949_v0  ;;  %v862_v7 = vmul.f32 2.0, %v858_v5  ;;  %v864_v8 = vmul.f32 2.0, %v860_v6  ;;  %v2953_v9 = vld [vmem:[%s3938_s18 + $0x18] sm:$0xff]   ;;  %v2954_v13 = vld [vmem:[%s3938_s18 + $0x10] sm:$0xff]   ;;  %v2955_v14 = vld [vmem:[%s3938_s18 + $0x8] sm:$0xff]  }
  0x48   : > { %980 = vmatprep.subr.bf16.mxu0 %v3168_v1  ;;  %v2956_v15 = vld [vmem:[%s3938_s18] sm:$0xff]   ;;  %v2957_v16 = vld [vmem:[%s3938_s18 + $0x58] sm:$0xff]   ;;  %v2958_v17 = vld [vmem:[%s3938_s18 + $0x50] sm:$0xff]  }
  0x49   : > { %v2622_v10 = vadd.f32 -1.0, %v862_v7  ;;  %v2624_v11 = vadd.f32 -1.0, %v864_v8  ;;  %v857_v18 = vld [vmem:[%s3357_s25] sm:$0xff]  ;;  %v859_v19 = vld [vmem:[%s3357_s25 + $0x10] sm:$0xff]  ;;  %v2959_v22 = vld [vmem:[%s3938_s18 + $0x48] sm:$0xff]  }
  0x4a   : > { %v861_v20 = vmul.f32 2.0, %v857_v18  ;;  %v863_v21 = vmul.f32 2.0, %v859_v19  ;;  %v2960_v25 = vld [vmem:[%s3938_s18 + $0x40] sm:$0xff]  }
  0x4b   : > { %981 = vmatpush1.bf16.msra.mxu0 %v2950_v2  ;;  %v870_v12 = vpack.c.bf16 %v2624_v11, %v2622_v10  ;;  %v2625_v27 = vld [vmem:[%s3939_s5] ss:$0 sm:$0xff] }
  0x4c   : > { %982 = vmatprep.subr.bf16.mxu0 %v3168_v1  ;;  %v2621_v23 = vadd.f32 -1.0, %v861_v20  ;;  %v2623_v24 = vadd.f32 -1.0, %v863_v21  ;;  %v1019_v31 = vld [vmem:[%s3940_s10] sm:$0x1] }
  0x4d   : > { %2638 = vmatprep.mubr.msk.bf16.mxu0 %vm974_vm0, %v870_v12 }
  0x4e   : > { %v869_v26 = vpack.c.bf16 %v2623_v24, %v2621_v23 }
  0x4f   : > { %983 = vmatpush1.bf16.msra.mxu0 %v2951_v3 }
  0x50   : > { %984 = vmatprep.subr.bf16.mxu0 %v3168_v1 }
  0x53   : > { %985 = vmatpush1.bf16.msra.mxu0 %v2952_v4 }
  0x54   : > { %986 = vmatprep.subr.bf16.mxu0 %v3168_v1 }
  0x57   : > { %987 = vmatpush1.bf16.msra.mxu0 %v2953_v9 }
  0x58   : > { %988 = vmatprep.subr.bf16.mxu0 %v3168_v1 }
  0x5b   : > { %989 = vmatpush1.bf16.msra.mxu0 %v2954_v13 }
  0x5c   : > { %990 = vmatprep.subr.bf16.mxu0 %v3168_v1 }
  0x5f   : > { %991 = vmatpush1.bf16.msra.mxu0 %v2955_v14 }
  0x60   : > { %992 = vmatprep.subr.bf16.mxu0 %v3168_v1 }
  0x63   : > { %993 = vmatpush1.bf16.msra.mxu0 %v2956_v15 }
  0x64   : > { %1002 = vmatprep.subr.bf16.mxu0 %v3168_v1 }
  0x67   : > { %1003 = vmatpush2.bf16.msra.mxu0 %v2957_v16 }
  0x68   : > { %1004 = vmatprep.subr.bf16.mxu0 %v3168_v1 }
  0x6b   : > { %1005 = vmatpush2.bf16.msra.mxu0 %v2958_v17 }
  0x6c   : > { %1006 = vmatprep.subr.bf16.mxu0 %v3168_v1 }
  0x6f   : > { %1007 = vmatpush2.bf16.msra.mxu0 %v2959_v22 }
  0x70   : > { %1008 = vmatprep.subr.bf16.mxu0 %v3168_v1 }
  0x73   : > { %1009 = vmatpush2.bf16.msra.mxu0 %v2960_v25 }
  0x76   : > { %1011 = vmatmul.mubr.bf16.vlgmr.msra.gmra.mxu0 %v869_v26 }
 0x136   : > { %v1012_v28 = vpop.f32.mrf.mxu0 }
 0x137   : > { %v1013_v29 = vadd.f32 %v2625_v27, %v1012_v28 }
 0x138   : > { %v1014_v30 = vpop.f32.mrf.mxu0 }
 0x139   : > { %v1023_v32 = vrot.slane %v1013_v29, 7 }
 0x13a   : > { %v1015_v33 = vpop.f32.mrf.mxu0 }
 0x13b   : > { %v1016_v34 = vadd.f32 %v2625_v27, %v1015_v33  ;;  %v1029_v35 = vsel %vm1022_vm1, %v1019_v31, %v1023_v32 }
 0x13c   : > { %1032 = vst.msk [vmem:[#allocation2] sm:$0xff] %vm1031_vm2, %v1029_v35  ;;  %v1017_v36 = vpop.f32.mrf.mxu0 }
 0x13d   : > { %v1024_v37 = vrot.slane %v1016_v34, 7 }
 0x13f   : > { %v1025_v38 = vsel %vm1022_vm1, %v1023_v32, %v1024_v37  ;;  %v1030_v39 = vsel %vm1022_vm1, %v1024_v37, 0.0 }
 0x140   : > { %1033 = vst.msk [vmem:[#allocation2 + $0x8] sm:$0xff] %vm1031_vm2, %v1025_v38  ;;  %1034 = vst.msk [vmem:[#allocation2 + $0x10] sm:$0xff] %vm1031_vm2, %v1030_v39 }
 0x141 PF: > { %vm1040_vm3 = vcmask 261120   ;;  %s3941_s6 = sld [smem:[#allocation18_spill]]  ;;  %s3946_s29 = scalar_lea.vmem %s3873_s7, %s3352_s0  ;;  %vm1222_vm4 = vcmask 64512   ;;  %vm1517_vm5 = vcmask 195584   ;;  %vm1669_vm6 = vcmask 1043456  }
 0x142   : > { %s3942_s2 = sld [smem:[#allocation23_spill]]  ;;  %v2641_v24 = vld [vmem:[%s3946_s29] ss:$0 sm:$0xff]  ;;  %s3169_s10 = smov 120   ;;  %vm1946_vm7 = vcmask 130048  }
 0x143   : > { %v1035_v40 = vld [vmem:[#allocation2] sm:$0xff]  ;;  %s3944_s25 = sld [smem:[#allocation24_spill]]  ;;  %s3171_s14 = smov 96  }
 0x144   : > { %v1041_v43 = vsel %vm1040_vm3, %v1035_v40, 0.0  ;;  %s3172_s21 = smov 104   ;;  %s3176_s20 = smov 24  }
 0x145   : > { %1042 = vadd.xlane.f32.xlu0 %v1041_v43  ;;  %s3948_s22 = scalar_lea.vmem %s3877_s11, %s3352_s0 }
 0x147   : > { %v1037_v41 = vld [vmem:[#allocation2 + $0x10] sm:$0xff]  ;;  %v1036_v42 = vld [vmem:[#allocation2 + $0x8] sm:$0xff]  ;;  %v2992_v62 = vld [vmem:[%s3941_s6] sm:$0xff]  }
 0x148   : > { %v1047_v44 = vsel %vm1040_vm3, %v1037_v41, 0.0  ;;  %v1044_v45 = vsel %vm1040_vm3, %v1036_v42, 0.0  ;;  %v2991_v61 = vld [vmem:[%s3941_s6 + $0x8] sm:$0xff]   ;;  %s3943_s24 = scalar_lea.vmem %s3942_s2, %s3352_s0  ;;  %s3170_s6 = smov 112  }
 0x149   : > { %1048 = vadd.xlane.f32.xlu1 %v1047_v44  ;;  %1045 = vadd.xlane.f32.xlu0 %v1044_v45  ;;  %v2639_v10 = vld [vmem:[%s3943_s24] ss:$0 sm:$0xff]  ;;  %s3945_s4 = scalar_lea.vmem %s3944_s25, %s3352_s0  ;;  %s3174_s2 = smov 8  }
 0x14a   : > { %2748 = vmatprep.subr.bf16.mxu0 %v2991_v61  ;;  %v2640_v16 = vld [vmem:[%s3945_s4] ss:$0 sm:$0xff]  ;;  %s3175_s24 = smov 16   ;;  %s3947_s25 = scalar_lea.vmem %s3875_s9, %s3352_s0 }
 0x14b   : > { %2749 = vmatpush3.bf16.msra.mxu0 %v2991_v61 }
 0x14c   : > { %2750 = vmatprep.subr.bf16.mxu0 %v2992_v62 }
 0x14f   : > { %2751 = vmatpush3.bf16.msra.mxu0 %v2992_v62 }
 0x1ce   : > { %v1043_v46 = vpop.xlane.xlu0 %1042 }
 0x1cf   : > { %v1051_v48 = vmul.f32 0.03125, %v1043_v46 }
 0x1d1   : > { %v1054_v50 = vsub.f32 %v1035_v40, %v1051_v48 }
 0x1d2   : > { %v1049_v47 = vpop.xlane.xlu1 %1048  ;;  %v1046_v52 = vpop.xlane.xlu0 %1045 }
 0x1d3   : > { %v1053_v49 = vmul.f32 0.03125, %v1049_v47  ;;  %v1052_v53 = vmul.f32 0.03125, %v1046_v52  ;;  %v1057_v54 = vmul.f32 %v1054_v50, %v1054_v50 }
 0x1d5   : > { %v1056_v51 = vsub.f32 %v1037_v41, %v1053_v49  ;;  %v1055_v56 = vsub.f32 %v1036_v42, %v1052_v53  ;;  %v1060_v57 = vsel %vm1040_vm3, %v1057_v54, 0.0 }
 0x1d6   : > { %1061 = vadd.xlane.f32.xlu1 %v1060_v57 }
 0x1d7   : > { %v1059_v55 = vmul.f32 %v1056_v51, %v1056_v51  ;;  %v1058_v59 = vmul.f32 %v1055_v56, %v1055_v56 }
 0x1d9   : > { %v1066_v58 = vsel %vm1040_vm3, %v1059_v55, 0.0  ;;  %v1063_v60 = vsel %vm1040_vm3, %v1058_v59, 0.0 }
 0x1da   : > { %1067 = vadd.xlane.f32.xlu1 %v1066_v58  ;;  %1064 = vadd.xlane.f32.xlu0 %v1063_v60 }
 0x25f   : > { %v1062_v63 = vpop.xlane.xlu1 %1061 }
 0x260   : > { %v1069_v0 = vmul.f32 0.03125, %v1062_v63 }
 0x262   : > { %v1072_v1 = vadd.f32 1e-12, %v1069_v0 }
 0x263   : > { %v1068_v2 = vpop.xlane.xlu1 %1067  ;;  %v1065_v3 = vpop.xlane.xlu0 %1064 }
 0x264   : > { %3005 = vrsqrt.f32 %v1072_v1  ;;  %v1071_v4 = vmul.f32 0.03125, %v1068_v2  ;;  %v1070_v5 = vmul.f32 0.03125, %v1065_v3 }
 0x266   : > { %v1074_v6 = vadd.f32 1e-12, %v1071_v4  ;;  %v1073_v7 = vadd.f32 1e-12, %v1070_v5 }
 0x268   : > { %3007 = vrsqrt.f32 %v1074_v6  ;;  %v1495_v6 = vld [vmem:[%s3402_s8 + $0x10] sm:$0xff] }
 0x269   : > { %3009 = vrsqrt.f32 %v1073_v7 }
 0x271   : > { %v3006_v8 = vpop.eup %3005 }
 0x272   : > { %v1078_v9 = vmul.f32 %v3006_v8, %v1054_v50 }
 0x274   : > { %v1087_v15 = vmul.f32 %v2639_v10, %v1078_v9  ;;  %v1493_v9 = vld [vmem:[%s3402_s8] sm:$0xff] }
 0x275   : > { %v3008_v11 = vpop.eup %3007 }
 0x276   : > { %v3010_v12 = vpop.eup %3009  ;;  %v1080_v13 = vmul.f32 %v3008_v11, %v1056_v51  ;;  %v1096_v20 = vadd.f32 %v2640_v16, %v1087_v15 }
 0x277   : > { %v1079_v14 = vmul.f32 %v3010_v12, %v1055_v56 }
 0x278   : > { %v1089_v17 = vmul.f32 %v2639_v10, %v1080_v13 }
 0x279   : > { %v1088_v18 = vmul.f32 %v2639_v10, %v1079_v14 }
 0x27a   : > { %v1098_v19 = vadd.f32 %v2640_v16, %v1089_v17 }
 0x27b   : > { %v1097_v21 = vadd.f32 %v2640_v16, %v1088_v18  ;;  %v1494_v16 = vld [vmem:[%s3402_s8 + $0x8] sm:$0xff] }
 0x27c   : > { %v1100_v22 = vpack.c.bf16 %v1098_v19, %v1098_v19 }
 0x27d   : > { %v1099_v23 = vpack.c.bf16 %v1097_v21, %v1096_v20 }
 0x27f   : > { %2752 = vmatprep.mubr.msk.bf16.mxu0 %vm1040_vm3, %v1099_v23 }
 0x280   : > { %2753 = vmatmul.mubr.msk.bf16.vlgmr.msra.gmra.mxu0 %vm1040_vm3, %v1100_v22  ;;  %v1498_v22 = vld [vmem:[%s3402_s8 + $0x28] sm:$0xff] }
 0x340   : > { %v2754_v25 = vpop.f32.mrf.mxu0 }
 0x341   : > { %v1173_v26 = vadd.f32 %v2754_v25, %v2641_v24  ;;  %v1496_v25 = vld [vmem:[%s3402_s8 + $0x18] sm:$0xff] }
 0x342   : > { %v1164_v27 = vpop.f32.mrf.mxu0 }
 0x343   : > { %1185 = vrot.lane.b32.xlu0 %v1173_v26, %s3169_s10  ;;  %v1165_v30 = vadd.f32 %v2641_v24, %v1164_v27  ;;  %v3507_v34 = vpack.c.bf16 %v1173_v26, %v1173_v26 }
 0x344   : > { %v2755_v28 = vpop.f32.mrf.mxu0 }
 0x346   : > { %v1167_v29 = vpop.f32.mrf.mxu0 }
 0x347   : > { %v1168_v31 = vadd.f32 %v2641_v24, %v1167_v29 }
 0x349   : > { %v2966_v32 = vpack.i.bf16 %v1168_v31, %v1165_v30  ;;  %v3503_v33 = vpack.c.bf16 %v1168_v31, %v1165_v30 }
 0x34b   : > { %2967 = vrot.lane.b32.xlu0 %v2966_v32, %s3170_s6  ;;  %2962 = vrot.lane.b32.xlu1 %v2966_v32, %s3169_s10  ;;  %s3949_s10 = scalar_lea.vmem %s3878_s12, %s3352_s0 }
 0x34c   : > { %2760 = vmatprep.mubr.msk.bf16.mxu0 %vm1222_vm4, %v3503_v33 }
 0x34f   : > { %1220 = vrot.lane.b32.xlu0 %v3507_v34, %s3171_s14  ;;  %1194 = vrot.lane.b32.xlu1 %v1173_v26, %s3170_s6 }
 0x353   : > { %1203 = vrot.lane.b32.xlu1 %v1173_v26, %s3172_s21 }
 0x357   : > { %2972 = vrot.lane.b32.xlu1 %v2966_v32, %s3172_s21  ;;  %s3950_s21 = scalar_lea.vmem %s3879_s13, %s3352_s0 }
 0x35b   : > { %1218 = vrot.lane.b32.xlu1 %v3503_v33, %s3171_s14 }
 0x3b5   : > { %v1186_v35 = vpop.permute.xlu0 %1185 }
 0x3b6   : > { %v3513_v36 = vpack.c.bf16 %v1186_v35, %v1186_v35 }
 0x3b8   : > { %1287 = vrot.lane.b32.xlu0 %v3513_v36, %s3171_s14 }
 0x3bd   : > { %v2968_v37 = vpop.permute.xlu0 %2967  ;;  %v2963_v38 = vpop.permute.xlu1 %2962 }
 0x3be   : > { %v2970_v39 = vunpack.i.h.bf16 %v2968_v37  ;;  %v2969_v40 = vunpack.i.l.bf16 %v2968_v37  ;;  %v2965_v41 = vunpack.i.h.bf16 %v2963_v38  ;;  %v2964_v42 = vunpack.i.l.bf16 %v2963_v38  ;;  %v1499_v38 = vld [vmem:[%s3402_s8 + $0x30] sm:$0xff] }
 0x3c0   : > { %v3517_v43 = vpack.c.bf16 %v2970_v39, %v2969_v40  ;;  %v3519_v44 = vpack.c.bf16 %v2965_v41, %v2964_v42  ;;  %v1497_v42 = vld [vmem:[%s3402_s8 + $0x20] sm:$0xff] }
 0x3c1   : > { %v1221_v45 = vpop.permute.xlu0 %1220  ;;  %v1195_v46 = vpop.permute.xlu1 %1194 }
 0x3c2   : > { %v1233_v47 = vsel %vm1222_vm4, %v1221_v45, 0  ;;  %v3522_v48 = vpack.c.bf16 %v1195_v46, %v1195_v46  ;;  %2856 = vmatprep.subr.msk.bf16.mxu0 %vm1222_vm4, %v1221_v45  ;;  %2776 = vmatprep.mubr.msk.bf16.mxu1 %vm1222_vm4, %v3517_v43 }
 0x3c3   : > { %1285 = vrot.lane.b32.xlu1 %v3519_v44, %s3171_s14  ;;  %2757 = vmatpush3.bf16.xpose.msra.mxu0 %v1233_v47  ;;  %v1500_v47 = vld [vmem:[%s3402_s8 + $0x38] sm:$0xff] }
 0x3c4   : > { %1353 = vrot.lane.b32.xlu0 %v3522_v48, %s3171_s14 }
 0x3c5   : > { %v1204_v49 = vpop.permute.xlu1 %1203 }
 0x3c6   : > { %v3531_v50 = vpack.c.bf16 %v1204_v49, %v1204_v49 }
 0x3c8   : > { %1351 = vrot.lane.b32.xlu0 %v3517_v43, %s3171_s14  ;;  %1419 = vrot.lane.b32.xlu1 %v3531_v50, %s3171_s14 }
 0x3c9   : > { %v2973_v51 = vpop.permute.xlu1 %2972 }
 0x3ca   : > { %v2975_v52 = vunpack.i.h.bf16 %v2973_v51  ;;  %v2974_v53 = vunpack.i.l.bf16 %v2973_v51 }
 0x3cc   : > { %v3537_v54 = vpack.c.bf16 %v2975_v52, %v2974_v53 }
 0x3cd   : > { %v1219_v55 = vpop.permute.xlu1 %1218 }
 0x3ce   : > { %v1230_v56 = vsel %vm1222_vm4, %v1219_v55, 0  ;;  %1417 = vrot.lane.b32.xlu1 %v3537_v54, %s3171_s14  ;;  %2857 = vmatprep.subr.msk.bf16.mxu0 %vm1222_vm4, %v1219_v55 }
 0x3cf   : > { %2759 = vmatpush3.bf16.xpose.msra.mxu0 %v1230_v56  ;;  %v1501_v56 = vld [vmem:[%s3402_s8 + $0x40] sm:$0xff] }
 0x3d6   : > { %2761 = vmatmul.mubr.msk.bf16.vlgmr.msra.gmra.mxu0 %vm1222_vm4, %v3507_v34 }
 0x3d7   : > { %2768 = vmatprep.mubr.msk.bf16.mxu0 %vm1222_vm4, %v3519_v44 }
 0x42a   : > { %v1288_v57 = vpop.permute.xlu0 %1287 }
 0x42b   : > { %v1299_v58 = vsel %vm1222_vm4, %v1288_v57, 0  ;;  %2858 = vmatprep.subr.msk.bf16.mxu0 %vm1222_vm4, %v1288_v57 }
 0x42c   : > { %2765 = vmatpush3.bf16.xpose.msra.mxu0 %v1299_v58 }
 0x435   : > { %v1286_v59 = vpop.permute.xlu1 %1285 }
 0x436   : > { %v1296_v60 = vsel %vm1222_vm4, %v1286_v59, 0  ;;  %2859 = vmatprep.subr.msk.bf16.mxu0 %vm1222_vm4, %v1286_v59  ;;  %v1354_v61 = vpop.permute.xlu0 %1353  ;;  %v1502_v59 = vld [vmem:[%s3402_s8 + $0x48] sm:$0xff] }
 0x437   : > { %2767 = vmatpush3.bf16.xpose.msra.mxu0 %v1296_v60  ;;  %2860 = vmatprep.subr.msk.bf16.mxu1 %vm1222_vm4, %v1354_v61  ;;  %v1365_v62 = vsel %vm1222_vm4, %v1354_v61, 0 }
 0x438   : > { %2773 = vmatpush3.bf16.xpose.msra.mxu1 %v1365_v62 }
 0x43a   : > { %v1352_v63 = vpop.permute.xlu0 %1351  ;;  %v1420_v0 = vpop.permute.xlu1 %1419 }
 0x43b   : > { %2861 = vmatprep.subr.msk.bf16.mxu1 %vm1222_vm4, %v1352_v63  ;;  %2862 = vmatprep.subr.msk.bf16.mxu0 %vm1222_vm4, %v1420_v0  ;;  %v1431_v1 = vsel %vm1222_vm4, %v1420_v0, 0  ;;  %v1362_v2 = vsel %vm1222_vm4, %v1352_v63, 0 }
 0x43e   : > { %2769 = vmatmul.mubr.msk.bf16.vlgmr.msra.gmra.mxu0 %vm1222_vm4, %v3513_v36 }
 0x43f   : > { %2781 = vmatpush3.bf16.xpose.msra.mxu0 %v1431_v1  ;;  %2784 = vmatprep.mubr.msk.bf16.mxu0 %vm1222_vm4, %v3537_v54 }
 0x440   : > { %2775 = vmatpush3.bf16.xpose.msra.mxu1 %v1362_v2  ;;  %v1418_v3 = vpop.permute.xlu1 %1417 }
 0x441   : > { %2863 = vmatprep.subr.msk.bf16.mxu0 %vm1222_vm4, %v1418_v3  ;;  %v1428_v4 = vsel %vm1222_vm4, %v1418_v3, 0  ;;  %v1504_v3 = vld [vmem:[%s3402_s8 + $0x58] sm:$0xff] }
 0x447   : > { %2783 = vmatpush3.bf16.xpose.msra.mxu0 %v1428_v4  ;;  %2777 = vmatmul.mubr.msk.bf16.vlgmr.msra.gmra.mxu1 %vm1222_vm4, %v3522_v48 }
 0x44e   : > { %2785 = vmatmul.mubr.msk.bf16.vlgmr.msra.gmra.mxu0 %vm1222_vm4, %v3531_v50 }
 0x496   : > { %v2762_v5 = vpop.f32.mrf.mxu0 }
 0x497   : > { %v1483_v7 = vmul.f32 0.35355338, %v2762_v5  ;;  %v1503_v5 = vld [vmem:[%s3402_s8 + $0x50] sm:$0xff]  ;;  %s3173_s8 = smov 64  }
 0x498   : > { %v1269_v8 = vpop.f32.mrf.mxu0 }
 0x499   : > { %v1481_v10 = vmul.f32 0.35355338, %v1269_v8  ;;  %v3569_v11 = vadd.f32 %v1495_v6, %v1483_v7 }
 0x49a   : > { %v2763_v12 = vpop.f32.mrf.mxu0 }
 0x49b   : > { %v1524_v13 = vsel %vm1517_vm5, %v3569_v11, -inf  ;;  %v3573_v14 = vadd.f32 %v1493_v9, %v1481_v10 }
 0x49c   : > { %1525 = vmax.xlane.f32.xlu0 %v1524_v13  ;;  %v1272_v15 = vpop.f32.mrf.mxu0 }
 0x49d   : > { %v1482_v17 = vmul.f32 0.35355338, %v1272_v15  ;;  %v1518_v18 = vsel %vm1517_vm5, %v3573_v14, -inf }
 0x49f   : > { %v3578_v19 = vadd.f32 %v1494_v16, %v1482_v17 }
 0x4a0   : > { %1519 = vmax.xlane.f32.xlu0 %v1518_v18 }
 0x4a1   : > { %v1521_v20 = vsel %vm1517_vm5, %v3578_v19, -inf }
 0x4a2   : > { %1522 = vmax.xlane.f32.xlu1 %v1521_v20 }
 0x4fe   : > { %v2770_v21 = vpop.f32.mrf.mxu0 }
 0x4ff   : > { %v1486_v23 = vmul.f32 0.35355338, %v2770_v21 }
 0x500   : > { %v1335_v24 = vpop.f32.mrf.mxu0 }
 0x501   : > { %v1484_v26 = vmul.f32 0.35355338, %v1335_v24  ;;  %v3584_v27 = vadd.f32 %v1498_v22, %v1486_v23 }
 0x502   : > { %v2771_v28 = vpop.f32.mrf.mxu0 }
 0x503   : > { %v1533_v29 = vsel %vm1517_vm5, %v3584_v27, -inf  ;;  %v3588_v30 = vadd.f32 %v1496_v25, %v1484_v26 }
 0x504   : > { %1534 = vmax.xlane.f32.xlu1 %v1533_v29  ;;  %v1338_v32 = vpop.f32.mrf.mxu0 }
 0x505   : > { %v1527_v31 = vsel %vm1517_vm5, %v3588_v30, -inf  ;;  %v1485_v39 = vmul.f32 0.35355338, %v1338_v32 }
 0x506   : > { %1528 = vmax.xlane.f32.xlu0 %v1527_v31 }
 0x507   : > { %v2778_v35 = vpop.f32.mrf.mxu1  ;;  %v3599_v55 = vadd.f32 %v1497_v42, %v1485_v39 }
 0x508   : > { %v1489_v49 = vmul.f32 0.35355338, %v2778_v35 }
 0x509   : > { %v1401_v37 = vpop.f32.mrf.mxu1  ;;  %v1530_v0 = vsel %vm1517_vm5, %v3599_v55, -inf }
 0x50a   : > { %v1487_v40 = vmul.f32 0.35355338, %v1401_v37  ;;  %v3609_v1 = vadd.f32 %v1501_v56, %v1489_v49 }
 0x50b   : > { %v2779_v41 = vpop.f32.mrf.mxu1 }
 0x50c   : > { %v3594_v45 = vadd.f32 %v1499_v38, %v1487_v40  ;;  %v1542_v7 = vsel %vm1517_vm5, %v3609_v1, -inf }
 0x50d   : > { %v1404_v46 = vpop.f32.mrf.mxu1 }
 0x50e   : > { %v1488_v51 = vmul.f32 0.35355338, %v1404_v46  ;;  %v2786_v52 = vpop.f32.mrf.mxu0  ;;  %v1536_v53 = vsel %vm1517_vm5, %v3594_v45, -inf }
 0x50f   : > { %1537 = vmax.xlane.f32.xlu0 %v1536_v53  ;;  %v1492_v61 = vmul.f32 0.35355338, %v2786_v52 }
 0x510   : > { %v1467_v57 = vpop.f32.mrf.mxu0  ;;  %v3602_v58 = vadd.f32 %v1500_v47, %v1488_v51 }
 0x511   : > { %v1490_v60 = vmul.f32 0.35355338, %v1467_v57  ;;  %v3619_v9 = vadd.f32 %v1504_v3, %v1492_v61 }
 0x512   : > { %v2787_v62 = vpop.f32.mrf.mxu0  ;;  %v1539_v63 = vsel %vm1517_vm5, %v3602_v58, -inf }
 0x513   : > { %1540 = vmax.xlane.f32.xlu1 %v1539_v63  ;;  %1531 = vmax.xlane.f32.xlu0 %v1530_v0  ;;  %v3611_v2 = vadd.f32 %v1502_v59, %v1490_v60  ;;  %v1551_v12 = vsel %vm1517_vm5, %v3619_v9, -inf }
 0x514   : > { %v1470_v4 = vpop.f32.mrf.mxu0 }
 0x515   : > { %v1491_v6 = vmul.f32 0.35355338, %v1470_v4  ;;  %v1545_v8 = vsel %vm1517_vm5, %v3611_v2, -inf }
 0x517   : > { %1543 = vmax.xlane.f32.xlu0 %v1542_v7  ;;  %1546 = vmax.xlane.f32.xlu1 %v1545_v8  ;;  %v3621_v10 = vadd.f32 %v1503_v5, %v1491_v6 }
 0x519   : > { %v1548_v13 = vsel %vm1517_vm5, %v3621_v10, -inf }
 0x51b   : > { %1552 = vmax.xlane.f32.xlu1 %v1551_v12  ;;  %1549 = vmax.xlane.f32.xlu0 %v1548_v13 }
 0x525   : > { %v1526_v15 = vpop.xlane.xlu0 %1525 }
 0x526   : > { %v1556_v16 = vsub.f32 %v3569_v11, %v1526_v15 }
 0x529   : > { %v1520_v17 = vpop.xlane.xlu0 %1519 }
 0x52a   : > { %v1554_v18 = vsub.f32 %v3573_v14, %v1520_v17 }
 0x52c   : > { %1723 = vrot.lane.b32.xlu1 %v3513_v36, %s3173_s8  ;;  %v1570_v36 = vmul.f32 1.442695, %v1556_v16  ;;  %v1566_v20 = vmul.f32 1.442695, %v1554_v18 }
 0x52e   : > { %3011 = vpow2.f32 %v1570_v36 }
 0x52f   : > { %3013 = vpow2.f32 %v1566_v20 }
 0x530   : > { %1658 = vrot.lane.b32.xlu1 %v3503_v33, %s3173_s8  ;;  %v1523_v33 = vpop.xlane.xlu1 %1522 }
 0x531   : > { %1660 = vrot.lane.b32.xlu0 %v3507_v34, %s3173_s8  ;;  %v1555_v34 = vsub.f32 %v3578_v19, %v1523_v33 }
 0x534   : > { %1721 = vrot.lane.b32.xlu1 %v3519_v44, %s3173_s8  ;;  %v1568_v44 = vmul.f32 1.442695, %v1555_v34 }
 0x535   : > { %1785 = vrot.lane.b32.xlu0 %v3522_v48, %s3173_s8 }
 0x536   : > { %3015 = vpow2.f32 %v1568_v44 }
 0x538   : > { %1847 = vrot.lane.b32.xlu1 %v3531_v50, %s3173_s8 }
 0x53b   : > { %v3642_v21 = vpop.eup %3011 }
 0x53c   : > { %v1596_v48 = vsel %vm1517_vm5, %v3642_v21, 0.0  ;;  %v3646_v50 = vpop.eup %3013 }
 0x53d   : > { %v1590_v11 = vsel %vm1517_vm5, %v3646_v50, 0.0 }
 0x543   : > { %v3650_v14 = vpop.eup %3015 }
 0x544   : > { %v1593_v19 = vsel %vm1517_vm5, %v3650_v14, 0.0 }
 0x554   : > { %1597 = vadd.xlane.f32.xlu0 %v1596_v48 }
 0x558   : > { %1591 = vadd.xlane.f32.xlu0 %v1590_v11 }
 0x55c   : > { %1594 = vadd.xlane.f32.xlu1 %v1593_v19 }
 0x58d   : > { %v1535_v22 = vpop.xlane.xlu1 %1534 }
 0x58e   : > { %v1559_v23 = vsub.f32 %v3584_v27, %v1535_v22 }
 0x58f   : > { %v1529_v24 = vpop.xlane.xlu0 %1528 }
 0x590   : > { %v1576_v25 = vmul.f32 1.442695, %v1559_v23  ;;  %v1557_v26 = vsub.f32 %v3588_v30, %v1529_v24 }
 0x592   : > { %3017 = vpow2.f32 %v1576_v25  ;;  %v1572_v28 = vmul.f32 1.442695, %v1557_v26 }
 0x594   : > { %3019 = vpow2.f32 %v1572_v28 }
 0x598   : > { %v1538_v29 = vpop.xlane.xlu0 %1537 }
 0x599   : > { %v1560_v38 = vsub.f32 %v3594_v45, %v1538_v29 }
 0x59b   : > { %v1578_v47 = vmul.f32 1.442695, %v1560_v38 }
 0x59c   : > { %v1541_v31 = vpop.xlane.xlu1 %1540  ;;  %v1532_v32 = vpop.xlane.xlu0 %1531 }
 0x59d   : > { %v1561_v35 = vsub.f32 %v3602_v58, %v1541_v31  ;;  %v1558_v46 = vsub.f32 %v3599_v55, %v1532_v32 }
 0x59f   : > { %v3657_v37 = vpop.eup %3017  ;;  %v1580_v39 = vmul.f32 1.442695, %v1561_v35  ;;  %v1574_v57 = vmul.f32 1.442695, %v1558_v46 }
 0x5a0   : > { %v1544_v40 = vpop.xlane.xlu0 %1543  ;;  %v1605_v27 = vsel %vm1517_vm5, %v3657_v37, 0.0  ;;  %v1547_v41 = vpop.xlane.xlu1 %1546 }
 0x5a1   : > { %v3662_v42 = vpop.eup %3019  ;;  %3021 = vpow2.f32 %v1580_v39  ;;  %v1562_v30 = vsub.f32 %v3609_v1, %v1544_v40  ;;  %1606 = vadd.xlane.f32.xlu1 %v1605_v27  ;;  %v1563_v51 = vsub.f32 %v3611_v2, %v1547_v41 }
 0x5a2   : > { %v1599_v45 = vsel %vm1517_vm5, %v3662_v42, 0.0 }
 0x5a3   : > { %v1582_v49 = vmul.f32 1.442695, %v1562_v30  ;;  %v1584_v58 = vmul.f32 1.442695, %v1563_v51 }
 0x5a4   : > { %v1553_v52 = vpop.xlane.xlu1 %1552  ;;  %v1550_v53 = vpop.xlane.xlu0 %1549 }
 0x5a5   : > { %3023 = vpow2.f32 %v1582_v49  ;;  %1600 = vadd.xlane.f32.xlu1 %v1599_v45  ;;  %v1565_v56 = vsub.f32 %v3619_v9, %v1553_v52  ;;  %v1564_v55 = vsub.f32 %v3621_v10, %v1550_v53 }
 0x5a6   : > { %3025 = vpow2.f32 %v1578_v47 }
 0x5a7   : > { %v1588_v59 = vmul.f32 1.442695, %v1565_v56  ;;  %v1586_v0 = vmul.f32 1.442695, %v1564_v55 }
 0x5a8   : > { %v1724_v60 = vpop.permute.xlu1 %1723  ;;  %v1661_v61 = vpop.permute.xlu0 %1660 }
 0x5a9   : > { %3027 = vpow2.f32 %v1588_v59  ;;  %v1733_v62 = vsel %vm1669_vm6, %v1724_v60, 0  ;;  %v1671_v63 = vsel %vm1669_vm6, %v1661_v61, 0  ;;  %2864 = vmatprep.subr.msk.bf16.mxu1 %vm1669_vm6, %v1661_v61  ;;  %2865 = vmatprep.subr.msk.bf16.mxu0 %vm1669_vm6, %v1724_v60 }
 0x5aa   : > { %3029 = vpow2.f32 %v1574_v57  ;;  %2789 = vmatpush3.bf16.msra.mxu1 %v1671_v63  ;;  %2797 = vmatpush3.bf16.msra.mxu0 %v1733_v62 }
 0x5ab   : > { %3031 = vpow2.f32 %v1584_v58 }
 0x5ac   : > { %v1659_v1 = vpop.permute.xlu1 %1658  ;;  %v1786_v2 = vpop.permute.xlu0 %1785  ;;  %3033 = vpow2.f32 %v1586_v0 }
 0x5ad   : > { %v1795_v3 = vsel %vm1669_vm6, %v1786_v2, 0  ;;  %2790 = vmatprep.subr.bf16.mxu1 %v1659_v1 }
 0x5ae   : > { %v3676_v4 = vpop.eup %3021  ;;  %2791 = vmatpush3.bf16.msra.mxu1 %v1659_v1 }
 0x5af   : > { %2866 = vmatprep.subr.msk.bf16.mxu1 %vm1669_vm6, %v1786_v2  ;;  %v1611_v5 = vsel %vm1517_vm5, %v3676_v4, 0.0 }
 0x5b0   : > { %1612 = vadd.xlane.f32.xlu1 %v1611_v5  ;;  %v1722_v6 = vpop.permute.xlu1 %1721 }
 0x5b1   : > { %2798 = vmatprep.subr.bf16.mxu0 %v1722_v6 }
 0x5b2   : > { %v3681_v7 = vpop.eup %3023  ;;  %2799 = vmatpush3.bf16.msra.mxu0 %v1722_v6 }
 0x5b3   : > { %v1614_v8 = vsel %vm1517_vm5, %v3681_v7, 0.0  ;;  %v3685_v9 = vpop.eup %3025 }
 0x5b4   : > { %v1848_v10 = vpop.permute.xlu1 %1847  ;;  %1615 = vadd.xlane.f32.xlu0 %v1614_v8  ;;  %v1608_v17 = vsel %vm1517_vm5, %v3685_v9, 0.0 }
 0x5b5   : > { %v3688_v12 = vsel %vm1669_vm6, %v1848_v10, 0  ;;  %2867 = vmatprep.subr.msk.bf16.mxu0 %vm1669_vm6, %v1848_v10 }
 0x5b6   : > { %v3691_v13 = vpop.eup %3027 }
 0x5b7   : > { %v3693_v15 = vpop.eup %3029  ;;  %v1623_v16 = vsel %vm1517_vm5, %v3691_v13, 0.0 }
 0x5b8   : > { %v3699_v36 = vpop.eup %3031  ;;  %1624 = vadd.xlane.f32.xlu1 %v1623_v16  ;;  %1609 = vadd.xlane.f32.xlu0 %v1608_v17  ;;  %v1602_v33 = vsel %vm1517_vm5, %v3693_v15, 0.0 }
 0x5b9   : > { %v1617_v18 = vsel %vm1517_vm5, %v3699_v36, 0.0  ;;  %v3705_v20 = vpop.eup %3033 }
 0x5ba   : > { %v1620_v34 = vsel %vm1517_vm5, %v3705_v20, 0.0 }
 0x5bc   : > { %1618 = vadd.xlane.f32.xlu1 %v1617_v18  ;;  %1603 = vadd.xlane.f32.xlu0 %v1602_v33 }
 0x5c0   : > { %1621 = vadd.xlane.f32.xlu0 %v1620_v34 }
 0x5cd   : > { %1845 = vrot.lane.b32.xlu1 %v3537_v54, %s3173_s8 }
 0x5d6   : > { %1783 = vrot.lane.b32.xlu0 %v3517_v43, %s3173_s8 }
 0x5dd   : > { %v1598_v44 = vpop.xlane.xlu0 %1597 }
 0x5de   : > { %3035 = vrcp.f32 %v1598_v44 }
 0x5e1   : > { %v1592_v48 = vpop.xlane.xlu0 %1591 }
 0x5e2   : > { %3037 = vrcp.f32 %v1592_v48 }
 0x5e5   : > { %v1595_v11 = vpop.xlane.xlu1 %1594 }
 0x5e6   : > { %3039 = vrcp.f32 %v1595_v11 }
 0x5eb   : > { %v3036_v19 = vpop.eup %3035 }
 0x5ec   : > { %v1640_v24 = vmul.f32 %v3036_v19, %v3642_v21 }
 0x5ee   : > { %v1651_v54 = vpack.c.bf16 %v1640_v24, %v1640_v24 }
 0x5ef   : > { %v3038_v22 = vpop.eup %3037 }
 0x5f0   : > { %v1638_v25 = vmul.f32 %v3038_v22, %v3646_v50 }
 0x5f3   : > { %v3040_v23 = vpop.eup %3039 }
 0x5f4   : > { %v1639_v26 = vmul.f32 %v3040_v23, %v3650_v14 }
 0x5f6   : > { %v1650_v28 = vpack.c.bf16 %v1639_v26, %v1638_v25 }
 0x5f8   : > { %2792 = vmatprep.mubr.msk.bf16.mxu1 %vm1517_vm5, %v1650_v28 }
 0x5f9   : > { %2793 = vmatmul.mubr.msk.bf16.vlgmr.msra.gmra.mxu1 %vm1517_vm5, %v1651_v54 }
 0x5fa   : > { %2805 = vmatpush3.bf16.msra.mxu1 %v1795_v3 }
 0x62a   : > { %v1607_v43 = vpop.xlane.xlu1 %1606 }
 0x62e   : > { %v1601_v29 = vpop.xlane.xlu1 %1600 }
 0x639   : > { %v1613_v31 = vpop.xlane.xlu1 %1612 }
 0x63d   : > { %v1616_v32 = vpop.xlane.xlu0 %1615 }
 0x63e   : > { %3041 = vrcp.f32 %v1616_v32 }
 0x63f   : > { %3043 = vrcp.f32 %v1613_v31 }
 0x641   : > { %v1625_v35 = vpop.xlane.xlu1 %1624  ;;  %v1610_v38 = vpop.xlane.xlu0 %1609 }
 0x642   : > { %3045 = vrcp.f32 %v1610_v38 }
 0x643   : > { %3047 = vrcp.f32 %v1607_v43 }
 0x644   : > { %3049 = vrcp.f32 %v1601_v29 }
 0x645   : > { %v1619_v21 = vpop.xlane.xlu1 %1618  ;;  %v1604_v50 = vpop.xlane.xlu0 %1603 }
 0x646   : > { %3051 = vrcp.f32 %v1604_v50 }
 0x647   : > { %3053 = vrcp.f32 %v1619_v21 }
 0x649   : > { %v1622_v14 = vpop.xlane.xlu0 %1621  ;;  %v1846_v1 = vpop.permute.xlu1 %1845 }
 0x64a   : > { %3055 = vrcp.f32 %v1622_v14 }
 0x64b   : > { %3057 = vrcp.f32 %v1625_v35  ;;  %v3042_v39 = vpop.eup %3041 }
 0x64c   : > { %v3044_v27 = vpop.eup %3043  ;;  %v1646_v30 = vmul.f32 %v3042_v39, %v3681_v7 }
 0x64d   : > { %v1784_v40 = vpop.permute.xlu0 %1783  ;;  %v1645_v49 = vmul.f32 %v3044_v27, %v3676_v4 }
 0x64e   : > { %2806 = vmatprep.subr.bf16.mxu1 %v1784_v40  ;;  %v1655_v53 = vpack.c.bf16 %v1646_v30, %v1646_v30 }
 0x64f   : > { %2807 = vmatpush3.bf16.msra.mxu1 %v1784_v40  ;;  %v3046_v41 = vpop.eup %3045 }
 0x650   : > { %v3048_v46 = vpop.eup %3047  ;;  %v1644_v47 = vmul.f32 %v3046_v41, %v3685_v9 }
 0x651   : > { %v3050_v51 = vpop.eup %3049  ;;  %v1643_v56 = vmul.f32 %v3048_v46, %v3657_v37 }
 0x652   : > { %v1654_v45 = vpack.c.bf16 %v1645_v49, %v1644_v47  ;;  %v1641_v58 = vmul.f32 %v3050_v51, %v3662_v42  ;;  %v2662_v47 = vld [vmem:[%s3947_s25] ss:$0 sm:$0xff] }
 0x653   : > { %v3052_v52 = vpop.eup %3051  ;;  %v1653_v61 = vpack.c.bf16 %v1643_v56, %v1643_v56 }
 0x654   : > { %v3054_v57 = vpop.eup %3053  ;;  %2808 = vmatprep.mubr.msk.bf16.mxu1 %vm1517_vm5, %v1654_v45  ;;  %v1642_v59 = vmul.f32 %v3052_v52, %v3693_v15  ;;  %v2667_v45 = vld [vmem:[%s3948_s22] ss:$0 sm:$0xff] }
 0x655   : > { %2809 = vmatmul.mubr.msk.bf16.vlgmr.msra.gmra.mxu1 %vm1517_vm5, %v1655_v53  ;;  %v1647_v62 = vmul.f32 %v3054_v57, %v3699_v36 }
 0x656   : > { %v1652_v60 = vpack.c.bf16 %v1642_v59, %v1641_v58 }
 0x657   : > { %v3056_v55 = vpop.eup %3055 }
 0x658   : > { %v1648_v63 = vmul.f32 %v3056_v55, %v3705_v20  ;;  %v3058_v0 = vpop.eup %3057  ;;  %2800 = vmatprep.mubr.msk.bf16.mxu0 %vm1517_vm5, %v1652_v60  ;;  %v3071_v55 = vld [vmem:[#allocation2] sm:$0xff] }
 0x659   : > { %2801 = vmatmul.mubr.msk.bf16.vlgmr.msra.gmra.mxu0 %vm1517_vm5, %v1653_v61  ;;  %v1649_v42 = vmul.f32 %v3058_v0, %v3691_v13  ;;  %v2994_v13 = vld [vmem:[%s3380_s3] sm:$0xff]  }
 0x65a   : > { %v1656_v37 = vpack.c.bf16 %v1648_v63, %v1647_v62  ;;  %2813 = vmatpush3.bf16.msra.mxu0 %v3688_v12  ;;  %v2993_v12 = vld [vmem:[%s3380_s3 + $0x8] sm:$0xff]   ;;  %v3072_v62 = vld [vmem:[#allocation2 + $0x10] sm:$0xff] }
 0x65b   : > { %2814 = vmatprep.subr.bf16.mxu0 %v1846_v1  ;;  %v1657_v2 = vpack.c.bf16 %v1649_v42, %v1649_v42  ;;  %2820 = vmatprep.subr.bf16.mxu1 %v2993_v12 }
 0x65c   : > { %2816 = vmatprep.mubr.msk.bf16.mxu0 %vm1517_vm5, %v1656_v37  ;;  %2821 = vmatpush3.bf16.msra.mxu1 %v2993_v12 }
 0x65d   : > { %2822 = vmatprep.subr.bf16.mxu1 %v2994_v13 }
 0x65e   : > { %2815 = vmatpush3.bf16.msra.mxu0 %v1846_v1  ;;  %v3073_v1 = vld [vmem:[#allocation2 + $0x8] sm:$0xff] }
 0x660   : > { %2823 = vmatpush3.bf16.msra.mxu1 %v2994_v13 }
 0x661   : > { %2817 = vmatmul.mubr.msk.bf16.vlgmr.msra.gmra.mxu0 %vm1517_vm5, %v1657_v2 }
 0x6b9   : > { %v2794_v3 = vpop.f32.mrf.mxu1 }
 0x6bb   : > { %v1707_v4 = vpop.f32.mrf.mxu1 }
 0x6bd   : > { %v2795_v5 = vpop.f32.mrf.mxu1 }
 0x6bf   : > { %v1710_v6 = vpop.f32.mrf.mxu1 }
 0x715   : > { %v2810_v7 = vpop.f32.mrf.mxu1 }
 0x717   : > { %v1831_v8 = vpop.f32.mrf.mxu1 }
 0x719   : > { %v2802_v9 = vpop.f32.mrf.mxu0  ;;  %v2811_v10 = vpop.f32.mrf.mxu1 }
 0x71a   : > { %1914 = vrot.lane.b32.xlu1 %v2802_v9, %s3174_s2 }
 0x71b   : > { %v1769_v15 = vpop.f32.mrf.mxu0  ;;  %v1834_v18 = vpop.f32.mrf.mxu1 }
 0x71c   : > { %v2981_v34 = vpack.i.bf16 %v1834_v18, %v1831_v8 }
 0x71d   : > { %v2803_v16 = vpop.f32.mrf.mxu0 }
 0x71e   : > { %1926 = vrot.lane.b32.xlu1 %v2810_v7, %s3175_s24 }
 0x71f   : > { %v1772_v17 = vpop.f32.mrf.mxu0 }
 0x720   : > { %v2976_v36 = vpack.i.bf16 %v1772_v17, %v1769_v15 }
 0x721   : > { %v2818_v33 = vpop.f32.mrf.mxu0 }
 0x722   : > { %2977 = vrot.lane.b32.xlu0 %v2976_v36, %s3174_s2  ;;  %1938 = vrot.lane.b32.xlu1 %v2818_v33, %s3176_s20 }
 0x723   : > { %v1893_v20 = vpop.f32.mrf.mxu0 }
 0x725   : > { %v2819_v44 = vpop.f32.mrf.mxu0 }
 0x726   : > { %2982 = vrot.lane.b32.xlu0 %v2981_v34, %s3175_s24  ;;  %v2996_v34 = vld [vmem:[%s3407_s27] sm:$0xff]   ;;  %s3951_s24 = scalar_lea.vmem %s3881_s15, %s3352_s0  ;;  %s3953_s0 = sld [smem:[#allocation8_spill]] }
 0x727   : > { %v1896_v48 = vpop.f32.mrf.mxu0 }
 0x728   : > { %v2986_v11 = vpack.i.bf16 %v1896_v48, %v1893_v20  ;;  %v2995_v20 = vld [vmem:[%s3407_s27 + $0x8] sm:$0xff]  }
 0x729   : > { %2828 = vmatprep.subr.bf16.mxu0 %v2995_v20 }
 0x72a   : > { %2987 = vrot.lane.b32.xlu0 %v2986_v11, %s3176_s20  ;;  %2829 = vmatpush3.bf16.msra.mxu0 %v2995_v20 }
 0x72b   : > { %2830 = vmatprep.subr.bf16.mxu0 %v2996_v34 }
 0x72c   : > { %p2685_p1 = scmp.ne.s32.totalorder %s3953_s0, 11 }
 0x72e   : > { %2831 = vmatpush3.bf16.msra.mxu0 %v2996_v34 }
 0x78c   : > { %v1915_v19 = vpop.permute.xlu1 %1914 }
 0x78d   : > { %v1945_v43 = vsel %vm1222_vm4, %v2794_v3, %v1915_v19 }
 0x790   : > { %v1927_v23 = vpop.permute.xlu1 %1926 }
 0x791   : > { %v1949_v31 = vsel %vm1946_vm7, %v1945_v43, %v1927_v23  ;;  %v2668_v43 = vld [vmem:[%s3949_s10] ss:$0 sm:$0xff] }
 0x794   : > { %v2978_v22 = vpop.permute.xlu0 %2977  ;;  %v1939_v29 = vpop.permute.xlu1 %1938 }
 0x795   : > { %v2980_v25 = vunpack.i.h.bf16 %v2978_v22  ;;  %v2979_v26 = vunpack.i.l.bf16 %v2978_v22  ;;  %v1952_v14 = vsel %vm1517_vm5, %v1949_v31, %v1939_v29 }
 0x796   : > { %v1954_v46 = vpack.c.bf16 %v1952_v14, %v1952_v14 }
 0x797   : > { %v1944_v35 = vsel %vm1222_vm4, %v1710_v6, %v2980_v25  ;;  %v1943_v38 = vsel %vm1222_vm4, %v1707_v4, %v2979_v26 }
 0x798   : > { %v2983_v24 = vpop.permute.xlu0 %2982 }
 0x799   : > { %v2985_v28 = vunpack.i.h.bf16 %v2983_v24  ;;  %v2984_v54 = vunpack.i.l.bf16 %v2983_v24 }
 0x79b   : > { %v1947_v39 = vsel %vm1946_vm7, %v1943_v38, %v2984_v54  ;;  %v1948_v40 = vsel %vm1946_vm7, %v1944_v35, %v2985_v28 }
 0x79c   : > { %v2988_v32 = vpop.permute.xlu0 %2987 }
 0x79d   : > { %v2990_v21 = vunpack.i.h.bf16 %v2988_v32  ;;  %v2989_v50 = vunpack.i.l.bf16 %v2988_v32 }
 0x79f   : > { %v1950_v27 = vsel %vm1517_vm5, %v1947_v39, %v2989_v50  ;;  %v1951_v41 = vsel %vm1517_vm5, %v1948_v40, %v2990_v21  ;;  %v2669_v21 = vld [vmem:[%s3950_s21] ss:$0 sm:$0xff] }
 0x7a0   : > { %v1953_v30 = vpack.c.bf16 %v1951_v41, %v1950_v27 }
 0x7a2   : > { %2824 = vmatprep.mubr.msk.bf16.mxu1 %vm1040_vm3, %v1953_v30 }
 0x7a3   : > { %2825 = vmatmul.mubr.msk.bf16.vlgmr.msra.gmra.mxu1 %vm1040_vm3, %v1954_v46  ;;  %v2997_v46 = vld [vmem:[%s3417_s26 + $0x38] sm:$0xff]  }
 0x7a4   : > { %2836 = vmatprep.subr.bf16.mxu1 %v2997_v46 }
 0x7a5   : > { %2837 = vmatpush3.bf16.msra.mxu1 %v2997_v46 }
 0x863   : > { %v2826_v49 = vpop.f32.mrf.mxu1 }
 0x864   : > { %v2027_v51 = vadd.f32 %v2826_v49, %v2662_v47  ;;  %v2999_v49 = vld [vmem:[%s3417_s26 + $0x28] sm:$0xff]  }
 0x865   : > { %v2018_v52 = vpop.f32.mrf.mxu1 }
 0x866   : > { %v2019_v53 = vadd.f32 %v2662_v47, %v2018_v52  ;;  %v2041_v57 = vmul.f32 %v2667_v45, %v2027_v51  ;;  %v3000_v51 = vld [vmem:[%s3417_s26 + $0x20] sm:$0xff]   ;;  %v3002_v52 = vld [vmem:[%s3417_s26 + $0x10] sm:$0xff]  }
 0x867   : > { %v2827_v56 = vpop.f32.mrf.mxu1 }
 0x868   : > { %v2039_v58 = vmul.f32 %v2667_v45, %v2019_v53  ;;  %v3756_v63 = vadd.f32 %v3072_v62, %v2041_v57  ;;  %v3003_v53 = vld [vmem:[%s3417_s26 + $0x8] sm:$0xff]   ;;  %v3004_v56 = vld [vmem:[%s3417_s26] sm:$0xff]  }
 0x869   : > { %v2021_v59 = vpop.f32.mrf.mxu1  ;;  %v2670_v57 = vld [vmem:[%s3951_s24] ss:$0 sm:$0xff] }
 0x86a   : > { %v3754_v60 = vadd.f32 %v3071_v55, %v2039_v58  ;;  %v2022_v61 = vadd.f32 %v2662_v47, %v2021_v59  ;;  %v2053_v3 = vsel %vm1040_vm3, %v3756_v63, 0.0  ;;  %v2998_v47 = vld [vmem:[%s3417_s26 + $0x30] sm:$0xff]  }
 0x86b   : > { %2838 = vmatprep.subr.bf16.mxu1 %v2998_v47 }
 0x86c   : > { %v2040_v0 = vmul.f32 %v2667_v45, %v2022_v61  ;;  %v2047_v37 = vsel %vm1040_vm3, %v3754_v60, 0.0  ;;  %2839 = vmatpush3.bf16.msra.mxu1 %v2998_v47  ;;  %v3001_v45 = vld [vmem:[%s3417_s26 + $0x18] sm:$0xff]  }
 0x86d   : > { %2048 = vadd.xlane.f32.xlu0 %v2047_v37  ;;  %2840 = vmatprep.subr.bf16.mxu1 %v2999_v49 }
 0x86e   : > { %v3760_v42 = vadd.f32 %v3073_v1, %v2040_v0 }
 0x870   : > { %v2050_v2 = vsel %vm1040_vm3, %v3760_v42, 0.0  ;;  %2841 = vmatpush3.bf16.msra.mxu1 %v2999_v49 }
 0x871   : > { %2051 = vadd.xlane.f32.xlu1 %v2050_v2  ;;  %2054 = vadd.xlane.f32.xlu0 %v2053_v3 }
 0x872   : > { %2842 = vmatprep.subr.bf16.mxu1 %v3000_v51 }
 0x874   : > { %2843 = vmatpush3.bf16.msra.mxu1 %v3000_v51 }
 0x875   : > { %2844 = vmatprep.subr.bf16.mxu1 %v3001_v45 }
 0x878   : > { %2845 = vmatpush3.bf16.msra.mxu1 %v3001_v45 }
 0x879   : > { %2846 = vmatprep.subr.bf16.mxu1 %v3002_v52 }
 0x87c   : > { %2847 = vmatpush3.bf16.msra.mxu1 %v3002_v52 }
 0x87d   : > { %2848 = vmatprep.subr.bf16.mxu1 %v3003_v53 }
 0x880   : > { %2849 = vmatpush3.bf16.msra.mxu1 %v3003_v53 }
 0x881   : > { %2850 = vmatprep.subr.bf16.mxu1 %v3004_v56 }
 0x884   : > { %2851 = vmatpush3.bf16.msra.mxu1 %v3004_v56 }
 0x8f6   : > { %v2049_v4 = vpop.xlane.xlu0 %2048 }
 0x8f7   : > { %v2056_v5 = vmul.f32 0.03125, %v2049_v4 }
 0x8f9   : > { %v2059_v6 = vsub.f32 %v3754_v60, %v2056_v5 }
 0x8fa   : > { %v2052_v7 = vpop.xlane.xlu1 %2051  ;;  %v2055_v8 = vpop.xlane.xlu0 %2054 }
 0x8fb   : > { %v2057_v9 = vmul.f32 0.03125, %v2052_v7  ;;  %v2058_v10 = vmul.f32 0.03125, %v2055_v8  ;;  %v2062_v12 = vmul.f32 %v2059_v6, %v2059_v6 }
 0x8fd   : > { %v2060_v15 = vsub.f32 %v3760_v42, %v2057_v9  ;;  %v2061_v16 = vsub.f32 %v3756_v63, %v2058_v10  ;;  %v2065_v13 = vsel %vm1040_vm3, %v2062_v12, 0.0 }
 0x8fe   : > { %2066 = vadd.xlane.f32.xlu0 %v2065_v13 }
 0x8ff   : > { %v2063_v17 = vmul.f32 %v2060_v15, %v2060_v15  ;;  %v2064_v36 = vmul.f32 %v2061_v16, %v2061_v16 }
 0x901   : > { %v2068_v18 = vsel %vm1040_vm3, %v2063_v17, 0.0  ;;  %v2071_v33 = vsel %vm1040_vm3, %v2064_v36, 0.0 }
 0x902   : > { %2069 = vadd.xlane.f32.xlu0 %v2068_v18  ;;  %2072 = vadd.xlane.f32.xlu1 %v2071_v33 }
 0x987   : > { %v2067_v44 = vpop.xlane.xlu0 %2066 }
 0x988   : > { %v2074_v48 = vmul.f32 0.03125, %v2067_v44 }
 0x98a   : > { %v2077_v11 = vadd.f32 1e-12, %v2074_v48 }
 0x98b   : > { %v2073_v19 = vpop.xlane.xlu1 %2072  ;;  %v2070_v22 = vpop.xlane.xlu0 %2069 }
 0x98c   : > { %3059 = vrsqrt.f32 %v2077_v11  ;;  %v2076_v23 = vmul.f32 0.03125, %v2073_v19  ;;  %v2075_v24 = vmul.f32 0.03125, %v2070_v22 }
 0x98e   : > { %v2079_v25 = vadd.f32 1e-12, %v2076_v23  ;;  %v2078_v26 = vadd.f32 1e-12, %v2075_v24 }
 0x990   : > { %3061 = vrsqrt.f32 %v2079_v25 }
 0x991   : > { %3063 = vrsqrt.f32 %v2078_v26 }
 0x999   : > { %v3060_v28 = vpop.eup %3059 }
 0x99a   : > { %v2083_v54 = vmul.f32 %v3060_v28, %v2059_v6  ;;  %v2675_v28 = vld [vmem:[%s848_s28] ss:$0 sm:$0xff] }
 0x99c   : > { %v2092_v38 = vmul.f32 %v2668_v43, %v2083_v54 }
 0x99d   : > { %v3062_v29 = vpop.eup %3061 }
 0x99e   : > { %v3064_v31 = vpop.eup %3063  ;;  %v2085_v32 = vmul.f32 %v3062_v29, %v2061_v16  ;;  %v2101_v40 = vadd.f32 %v2669_v21, %v2092_v38 }
 0x99f   : > { %v2084_v35 = vmul.f32 %v3064_v31, %v2060_v15 }
 0x9a0   : > { %v2094_v50 = vmul.f32 %v2668_v43, %v2085_v32 }
 0x9a1   : > { %v2093_v14 = vmul.f32 %v2668_v43, %v2084_v35  ;;  %v2684_v43 = vld [vmem:[%s851_s19] ss:$0 sm:$0xff] }
 0x9a2   : > { %v2103_v39 = vadd.f32 %v2669_v21, %v2094_v50 }
 0x9a3   : > { %v2102_v27 = vadd.f32 %v2669_v21, %v2093_v14 }
 0x9a4   : > { %v2105_v41 = vpack.c.bf16 %v2103_v39, %v2103_v39 }
 0x9a5   : > { %v2104_v30 = vpack.c.bf16 %v2102_v27, %v2101_v40 }
 0x9a7   : > { %2832 = vmatprep.mubr.msk.bf16.mxu0 %vm1040_vm3, %v2104_v30 }
 0x9a8   : > { %2833 = vmatmul.mubr.msk.bf16.vlgmr.msra.gmra.mxu0 %vm1040_vm3, %v2105_v41 }
 0xa68   : > { %v2834_v58 = vpop.f32.mrf.mxu0 }
 0xa69   : > { %v2178_v59 = vadd.f32 %v2834_v58, %v2670_v57 }
 0xa6a   : > { %v2169_v55 = vpop.f32.mrf.mxu0 }
 0xa6b   : > { %v2185_v61 = vmul.f32 %v2178_v59, %v2178_v59  ;;  %v2170_v62 = vadd.f32 %v2670_v57, %v2169_v55 }
 0xa6c   : > { %v2835_v0 = vpop.f32.mrf.mxu0 }
 0xa6d   : > { %v2188_v37 = vmul.f32 %v2185_v61, %v2178_v59  ;;  %v2183_v1 = vmul.f32 %v2170_v62, %v2170_v62 }
 0xa6e   : > { %v2172_v2 = vpop.f32.mrf.mxu0 }
 0xa6f   : > { %v2191_v3 = vmul.f32 0.044715, %v2188_v37  ;;  %v2186_v4 = vmul.f32 %v2183_v1, %v2170_v62  ;;  %v2173_v5 = vadd.f32 %v2670_v57, %v2172_v2 }
 0xa71   : > { %v2194_v6 = vadd.f32 %v2191_v3, %v2178_v59  ;;  %v2189_v7 = vmul.f32 0.044715, %v2186_v4  ;;  %v2184_v8 = vmul.f32 %v2173_v5, %v2173_v5 }
 0xa73   : > { %v2197_v9 = vmul.f32 0.7978846, %v2194_v6  ;;  %v2192_v10 = vadd.f32 %v2189_v7, %v2170_v62  ;;  %v2187_v12 = vmul.f32 %v2184_v8, %v2173_v5 }
 0xa75   : > { %3065 = vtanh.f32 %v2197_v9  ;;  %v2195_v15 = vmul.f32 0.7978846, %v2192_v10  ;;  %v2190_v16 = vmul.f32 0.044715, %v2187_v12 }
 0xa77   : > { %3067 = vtanh.f32 %v2195_v15  ;;  %v2193_v13 = vadd.f32 %v2190_v16, %v2173_v5 }
 0xa79   : > { %v2196_v17 = vmul.f32 0.7978846, %v2193_v13 }
 0xa7b   : > { %3069 = vtanh.f32 %v2196_v17 }
 0xa82   : > { %v3066_v36 = vpop.eup %3065 }
 0xa83   : > { %v2203_v33 = vadd.f32 1.0, %v3066_v36 }
 0xa84   : > { %v3068_v18 = vpop.eup %3067 }
 0xa85   : > { %v2201_v20 = vadd.f32 1.0, %v3068_v18  ;;  %v2206_v44 = vmul.f32 0.5, %v2203_v33 }
 0xa87   : > { %v2204_v11 = vmul.f32 0.5, %v2201_v20  ;;  %v2209_v22 = vmul.f32 %v2206_v44, %v2178_v59 }
 0xa88   : > { %v3070_v34 = vpop.eup %3069 }
 0xa89   : > { %v2202_v48 = vadd.f32 1.0, %v3070_v34  ;;  %v2207_v23 = vmul.f32 %v2204_v11, %v2170_v62  ;;  %v2211_v26 = vpack.c.bf16 %v2209_v22, %v2209_v22 }
 0xa8b   : > { %v2205_v19 = vmul.f32 0.5, %v2202_v48 }
 0xa8d   : > { %v2208_v24 = vmul.f32 %v2205_v19, %v2173_v5 }
 0xa8f   : > { %v2210_v25 = vpack.c.bf16 %v2208_v24, %v2207_v23 }
 0xa91   : > { %2852 = vmatprep.mubr.bf16.mxu1 %v2210_v25 }
 0xa92   : > { %2853 = vmatmul.mubr.bf16.vlgmr.msra.gmra.mxu1 %v2211_v26 }
 0xb52   : > { %v2854_v54 = vpop.f32.mrf.mxu1 }
 0xb53   : > { %v2326_v29 = vadd.f32 %v2854_v54, %v2675_v28 }
 0xb54   : > { %v2317_v31 = vpop.f32.mrf.mxu1 }
 0xb55   : > { %v2340_v32 = vmul.f32 %v2684_v43, %v2326_v29  ;;  %v2318_v35 = vadd.f32 %v2675_v28, %v2317_v31 }
 0xb56   : > { %v2855_v38 = vpop.f32.mrf.mxu1 }
 0xb57   : > { %v2343_v21 = vadd.f32 %v2340_v32, %v3756_v63  ;;  %v2338_v50 = vmul.f32 %v2684_v43, %v2318_v35 }
 0xb58   : > { %v2320_v14 = vpop.f32.mrf.mxu1 }
 0xb59   : > { %2346 = vst.msk [vmem:[#allocation2 + $0x10] sm:$0xff] %vm1040_vm3, %v2343_v21  ;;  %v2341_v39 = vadd.f32 %v2338_v50, %v3754_v60  ;;  %v2321_v40 = vadd.f32 %v2675_v28, %v2320_v14 }
 0xb5b   : > { %2344 = vst.msk [vmem:[#allocation2] sm:$0xff] %vm1040_vm3, %v2341_v39  ;;  %v2339_v27 = vmul.f32 %v2684_v43, %v2321_v40  ;;  %2350 = sbr.rel (%p2685_p1) target bundleno = 2933 (0xb75), region = 104 }
 0xb5d   : > { %v2342_v41 = vadd.f32 %v2339_v27, %v3760_v42 }
 0xb5f   : > { %2345 = vst.msk [vmem:[#allocation2 + $0x8] sm:$0xff] %vm1040_vm3, %v2342_v41 }
 0xb60   : > { %vm2354_vm8 = vcmask 1046528   ;;  %v2355_v30 = vrot.slane %v2341_v39, 1  ;;  %v2356_v63 = vrot.slane %v2342_v41, 1  ;;  %v2358_v46 = vrot.slane %v2343_v21, 1 }
 0xb61   : > { %vm2373_vm9 = vcmask 253952  }
 0xb62   : > { %v2357_v47 = vsel %vm2354_vm8, %v2355_v30, %v2356_v63  ;;  %v2359_v49 = vsel %vm2354_vm8, %v2356_v63, %v2358_v46 }
 0xb63   : > { %v2362_v60 = vsel %vm1040_vm3, %v2357_v47, 0.0  ;;  %v2363_v51 = vsel %vm1040_vm3, %v2359_v49, 0.0 }
 0xb64   : > { %v2364_v45 = vadd.f32 %v2363_v51, %v2362_v60 }
 0xb66   : > { %v2365_v52 = vrot.slane %v2364_v45, 4 }
 0xb68   : > { %v2366_v53 = vadd.f32 %v2365_v52, %v2364_v45 }
 0xb6a   : > { %v2367_v42 = vrot.slane %v2366_v53, 2 }
 0xb6c   : > { %v2368_v56 = vadd.f32 %v2367_v42, %v2366_v53 }
 0xb6e   : > { %v2369_v57 = vrot.slane %v2368_v56, 1 }
 0xb70   : > { %v2370_v58 = vadd.f32 %v2369_v57, %v2368_v56 }
 0xb72   : > { %v2372_v59 = vmul.f32 0.0625, %v2370_v58 }
 0xb74   : > { %2374 = vst.msk [vmem:[%s3429_s23] sm:$0x1] %vm2373_vm9, %v2372_v59 }
 0xb75 PF: > { %s3954_s28 = sld [smem:[#allocation9_spill]]  ;;  %s2388_s10 = sshll.u32 %s3429_s23, 4  ;;  %s2389_s10 = int_to_ptr.vmem [resolvable:$true] %s2388_s10 }
 0xb76   : > { %s3956_s27 = sld [smem:[#allocation30_spill]]  ;;  %s3957_s6 = sand.u32 1, %s3142_s30  }
 0xb77   : > { %s2376_s14 = scalar_lea.sflag [#allocation4], %s3957_s6  ;;  %s3074_s21 = scalar_lea.vmem %s2389_s10, 16 }
 0xb78   : > { %p3075_p2 = scmp.ne.s32.totalorder %s2389_s10, %s3074_s21  ;;  %s3177_s8 = smov [#allocation3]  }
 0xb79   : > { %s3078_s2 = sshll.u32 %s3177_s8, 4  ;;  %s3079_s2 = int_to_ptr.vmem [resolvable:$false] %s3078_s2 }
 0xb7a   : > { %p3076_p4 = pnand %p3075_p2, %p3327_p3  ;;  %s3080_s24 = scalar_lea.vmem %s3079_s2, 32 }
 0xb7b   : > { %s2686_s4 = sshll.u32 %s3954_s28, 4  ;;  %p3081_p6 = scmp.lt.s32.totalorder %s2389_s10, %s3079_s2 }
 0xb7c   : > { %s2386_s29 = scalar_lea.hbm %s3956_s27, %s2686_s4  ;;  %p3077_p5 = pneg %p3076_p4 }
 0xb7d   : > { %p3082_p7 = scmp.lt.s32.totalorder %s3080_s24, %s3074_s21 }
 0xb7f   : > { %p3083_p8 = por %p3082_p7, %p3081_p6 }
 0xb81   : > { %p3084_p10 = pnand %p3083_p8, %p3077_p5 }
 0xb83   : > { %3087 = shalt.err (!%p3084_p10)
}
 0xb84   : > { %s3088_s26 = scalar_lea.hbm %s2386_s29, 16  ;;  %s3092_s3 = scalar_lea.hbm %s3956_s27, 32 }
 0xb85   : > { %p3089_p11 = scmp.ne.s32.totalorder %s2386_s29, %s3088_s26  ;;  %p3093_p0 = scmp.lt.s32.totalorder %s2386_s29, %s3956_s27 }
 0xb86   : > { %p3094_p1 = scmp.lt.s32.totalorder %s3092_s3, %s3088_s26 }
 0xb87   : > { %p3090_p12 = pnand %p3089_p11, %p3327_p3 }
 0xb88   : > { %p3095_p2 = por %p3094_p1, %p3093_p0 }
 0xb89   : > { %p3091_p13 = pneg %p3090_p12 }
 0xb8b   : > { %p3096_p4 = pnand %p3095_p2, %p3091_p13 }
 0xb8d   : > { %3099 = shalt.err (!%p3096_p4)
}
 0xb8e   : > { %2869 = dma.vmem_to_hbm [thread:$0]  (%p3327_p3), %s2389_s10, 16, %s2386_s29, %s2376_s14  }
 0xb8f PF: > { %s3958_s0 = sld [smem:[#allocation12_spill]] }
 0xb90   : > { %s3959_s28 = sld [smem:[#allocation6_spill]] }
 0xb95   : > { %p2875_p5 = scmp.ge.s32.totalorder %s3958_s0, 2 }
 0xb96   : > { %s2400_s5 = sand.u32 1, %s3959_s28  }
 0xb97   : > { %p2872_p6 = pnand %p2875_p5, %p3337_p9  ;;  %s2401_s22 = scalar_lea.sflag [#allocation4], %s2400_s5 }
 0xb99   : > { %p2873_p7 = pneg %p2872_p6 }
 0xb9b   : > { %3133 = dma.done.wait (%p2873_p7), %s2401_s22, 16  }
 0xb9c   : > { %3135 = vsyncadd (%p2873_p7), %s2401_s22, 4294967280  ;;  %s32_s23 = sadd.s32 1, %s3958_s0   ;;  %s3961_s6 = sld [smem:[#allocation7_spill]] }
 0xb9d   : > { %p29_p8 = scmp.ge.s32.totalorder %s32_s23, 26   ;;  %s3962_s20 = sld [smem:[#allocation17_spill]] }
 0xb9e   : > { %s3963_s21 = sld [smem:[#allocation10_spill]]  ;;  %s3967_s0 = smov %s3142_s30 }
 0xb9f   : > { %s3964_s1 = sld [smem:[#allocation11_spill]]  ;;  %31 = sbr.rel (!%p29_p8) target bundleno = 18 (0x12), region = 184 }
 0xba0   : > { %s3965_s22 = sld [smem:[#allocation13_spill]] }
 0xba1   : > { %s3966_s2 = sld [smem:[#allocation15_spill]] }
 0xba2   : > { %s3968_s30 = smov %s3961_s6 }
 0xba4   :  { %2405 = vsyncpa [#allocation4], 1 }
 0xba5   :  { %2407 = vsyncpa [#allocation4 + $0x1], 1 }

</bundles_post_ra>
